<compile_context>
chip_gen: v6e
topology: v6e:2x2x1
jax: 0.10.0
libtpu: 0.0.40
codegen_flags: <defaults>
</compile_context>

<pallas_src>
import math

import jax
import jax.numpy as jnp
from jax.experimental import pallas as pl
from jax.experimental.pallas import tpu as pltpu


def make_attention_kernel(b_blk, T, C, n_head, t):
    """Fused attention kernel for static (b_blk, T, C, n_head, target_length=t)."""
    hd = C // n_head
    rows = b_blk * T

    def kernel(x_ref, wqkv_ref, bqkv_ref, wp_ref, bp_ref, o_ref):
        neg = jnp.float32(-1e30)

        # ---- fused QKV projection: one (rows, C) x (C, 3C) MXU pass -------------
        xf = x_ref[...].reshape(rows, C)                         # bf16
        qkv = jnp.dot(xf, wqkv_ref[...],
                      preferred_element_type=jnp.float32) + bqkv_ref[...]
        # NOTE: the 1/sqrt(hd) scale is already folded into the q columns (wrapper).
        q = qkv[:, 0 * C:1 * C].reshape(b_blk, T, C).astype(jnp.bfloat16)
        k = qkv[:, 1 * C:2 * C].reshape(b_blk, T, C).astype(jnp.bfloat16)
        v = qkv[:, 2 * C:3 * C].reshape(b_blk, T, C).astype(jnp.bfloat16)

        # ---- additive mask, (T, T) only; batch broadcast happens implicitly -----
        # position i may attend to key j iff (j <= i) OR (j < T - t + 1)
        row = jax.lax.broadcasted_iota(jnp.int32, (T, T), 0)
        col = jax.lax.broadcasted_iota(jnp.int32, (T, T), 1)
        allowed = (col <= row) | (col < (T - t + 1))
        bias = jnp.where(allowed, jnp.float32(0.0), neg)         # (T, T) f32

        # ---- per-head attention; heads concatenated, projected ONCE afterwards --
        # TODO(synk): head-batched contraction / fori_loop + key-block tiling for
        # large n_head or T (see header TODOs).
        y_parts = []
        for h in range(n_head):                                  # static unroll
            sl = slice(h * hd, (h + 1) * hd)
            qh = q[:, :, sl]                                     # (b_blk, T, hd) bf16
            kh = k[:, :, sl]
            vh = v[:, :, sl]

            # scores: contract last axes directly (no explicit K transpose / XLU)
            att = jnp.einsum('bqd,bkd->bqk', qh, kh,
                             preferred_element_type=jnp.float32)
            att = att + bias                                     # implicit batch bcast

            # numerically stable softmax over keys (f32 on VPU, exp/recip on EUP)
            m = jnp.max(att, axis=-1, keepdims=True)
            e = jnp.exp(att - m)
            denom = jnp.sum(e, axis=-1, keepdims=True)
            p = e * pl.reciprocal(denom, approx=True)
            # TODO(synk): attn_drop (stochastic dropout) skipped -> identity (eval)

            y_parts.append(
                jnp.einsum('bqk,bkd->bqd', p.astype(jnp.bfloat16), vh,
                           preferred_element_type=jnp.float32))  # (b_blk, T, hd) f32

        # single full-depth output projection: (rows, C) x (C, C); K = C fills MXU
        y = jnp.concatenate(y_parts, axis=-1).reshape(rows, C).astype(jnp.bfloat16)
        out = jnp.dot(y, wp_ref[...], preferred_element_type=jnp.float32) + bp_ref[...]
        # TODO(synk): resid_drop skipped -> identity (eval mode)
        o_ref[...] = out.reshape(b_blk, T, C).astype(o_ref.dtype)

    return kernel


def _vmem_cap_bytes():
    """Generation-aware VMEM cap: ~85% of physical VMEM (leaves compiler headroom)."""
    try:
        return int(pltpu.get_tpu_info().vmem_capacity_bytes * 0.85)
    except Exception:
        return 48 << 20                                          # safe on every gen


def _pick_batch_block(B, T, target_rows=512, min_grid=2):
    """Batch elements per grid step.

    Targets ~512 MXU rows per step (multiple of both 128- and 256-deep MXUs) but
    guarantees >= min_grid grid steps whenever B allows it, so both v7x TensorCores
    get work and the x / out blocks actually double-buffer across steps.
    """
    b_blk = max(1, min(B, max(1, target_rows // max(T, 1))))
    while B % b_blk:
        b_blk -= 1
    if B // b_blk < min_grid and B >= min_grid:
        b_blk = B // min_grid
        while B % b_blk:
            b_blk -= 1
    return b_blk


def causal_self_attention(x, params, n_head, target_length, out_dtype=None):
    """x: (B, T, C) float32. params: (wq, bq, wk, bk, wv, bv, wp, bp), weights (in, out).

    Pass out_dtype=jnp.bfloat16 to halve output writeback bytes when the consumer
    accepts bf16 (defaults to x.dtype)."""
    B, T, C = x.shape
    hd = C // n_head
    scale = 1.0 / math.sqrt(hd)
    wq, bq, wk, bk, wv, bv, wp, bp = params
    out_dtype = x.dtype if out_dtype is None else jnp.dtype(out_dtype)

    # Fold the attention scale into the query projection (free, wrapper side),
    # fuse QKV weights into one (C, 3C) operand, and cast matmul operands to bf16.
    wqkv = jnp.concatenate([wq * scale, wk, wv], axis=1).astype(jnp.bfloat16)
    bqkv = jnp.concatenate([bq * scale, bk, bv]).reshape(1, 3 * C).astype(jnp.float32)
    wp_b = wp.astype(jnp.bfloat16)
    bp_b = bp.reshape(1, C).astype(jnp.float32)
    x_b = x.astype(jnp.bfloat16)

    b_blk = _pick_batch_block(B, T)
    grid = (B // b_blk,)
    rows = b_blk * T

    kernel = make_attention_kernel(b_blk, T, C, n_head, target_length)

    out_isize = jnp.dtype(out_dtype).itemsize
    flops = (2 * B * T * C * 3 * C              # fused QKV projection
             + 2 * B * n_head * T * T * hd * 2  # q@k^T and p@v
             + 2 * B * T * C * C)               # output projection
    cost = pl.CostEstimate(
        flops=flops,
        transcendentals=B * n_head * T * T + B * n_head * T,
        bytes_accessed=(x_b.size * 2 + B * T * C * out_isize
                        + (wqkv.size + wp_b.size) * 2 + (bqkv.size + bp_b.size) * 4),
    )

    def run(single_buffer_weights):
        wkw = ({"pipeline_mode": pl.Buffered(1)} if single_buffer_weights else {})
        wbuf = 1 if single_buffer_weights else 2
        # Tight per-buffer VMEM count for the chosen block (no double hedging).
        vmem_bytes = (
            2 * rows * C * 2                     # x blocks (bf16, double buffered)
            + 2 * rows * C * out_isize           # out blocks (double buffered)
            + wbuf * (3 * C * C + C * C) * 2     # weights (bf16)
            + wbuf * 4 * C * 4                   # biases (f32)
            + rows * 3 * C * 4                   # qkv f32 accumulator
            + rows * 3 * C * 2                   # q/k/v bf16 copies
            + 3 * b_blk * T * T * 4              # att / e / p (one head live)
            + 2 * rows * C * 4                   # y concat + projected out (f32)
        )
        vmem_limit = int(min(max(int(vmem_bytes * 1.25) + (4 << 20), 32 << 20),
                             _vmem_cap_bytes()))
        return pl.pallas_call(
            kernel,
            out_shape=jax.ShapeDtypeStruct((B, T, C), out_dtype),
            grid=grid,
            in_specs=[
                pl.BlockSpec((b_blk, T, C), lambda b: (b, 0, 0)),       # x
                pl.BlockSpec((C, 3 * C), lambda b: (0, 0), **wkw),      # fused QKV weight
                pl.BlockSpec((1, 3 * C), lambda b: (0, 0), **wkw),      # fused QKV bias
                pl.BlockSpec((C, C), lambda b: (0, 0), **wkw),          # proj weight
                pl.BlockSpec((1, C), lambda b: (0, 0), **wkw),          # proj bias
            ],
            out_specs=pl.BlockSpec((b_blk, T, C), lambda b: (b, 0, 0)),
            compiler_params=pltpu.CompilerParams(
                dimension_semantics=("parallel",),
                vmem_limit_bytes=vmem_limit,
            ),
            cost_estimate=cost,
        )(x_b, wqkv, bqkv, wp_b, bp_b)

    try:
        return run(single_buffer_weights=True)
    except Exception:
        # This jax build rejected pipeline_mode=pl.Buffered(1) for grid-invariant
        # blocks; fall back to default double-buffered weights (correctness intact).
        return run(single_buffer_weights=False)


def init_linear(key, n_in, n_out):
    """PyTorch nn.Linear default init: U(-1/sqrt(in), 1/sqrt(in)).
    Returns weight already transposed to (in, out) so y = x @ w_t + b."""
    kw, kb = jax.random.split(key)
    bound = 1.0 / math.sqrt(n_in)
    w = jax.random.uniform(kw, (n_out, n_in), jnp.float32, -bound, bound)
    b = jax.random.uniform(kb, (n_out,), jnp.float32, -bound, bound)
    return w.T, b


def reference(x, params, n_head, t):
    """Pure-JAX f32 reference mirroring the PyTorch forward (eval mode)."""
    B, T, C = x.shape
    hd = C // n_head
    wq, bq, wk, bk, wv, bv, wp, bp = params
    q = (x @ wq + bq).reshape(B, T, n_head, hd).transpose(0, 2, 1, 3)
    k = (x @ wk + bk).reshape(B, T, n_head, hd).transpose(0, 2, 1, 3)
    v = (x @ wv + bv).reshape(B, T, n_head, hd).transpose(0, 2, 1, 3)
    att = (q @ jnp.swapaxes(k, -2, -1)) * (1.0 / math.sqrt(hd))
    row = jnp.arange(T)[:, None]
    col = jnp.arange(T)[None, :]
    allowed = (col <= row) | (col < (T - t + 1))
    att = jnp.where(allowed[None, None], att, -jnp.inf)
    att = jax.nn.softmax(att, axis=-1)
    y = (att @ v).transpose(0, 2, 1, 3).reshape(B, T, C)
    return y @ wp + bp


if __name__ == "__main__":
    # config: n_embd=32, n_head=4, n_context=16, target_length=4
    B, T, C = 2, 8, 32
    n_head = 4
    target_length = 4

    key = jax.random.PRNGKey(0)
    kx, kq, kk, kv, kp = jax.random.split(key, 5)

    x = jax.random.normal(kx, (B, T, C), jnp.float32)
    params = (*init_linear(kq, C, C),
              *init_linear(kk, C, C),
              *init_linear(kv, C, C),
              *init_linear(kp, C, C))

    out = causal_self_attention(x, params, n_head, target_length)
    out = jax.block_until_ready(out)

    ref = reference(x, params, n_head, target_length)
    assert out.shape == (B, T, C)
    # bf16 MXU operands + approximate reciprocal -> ~1e-2-level tolerance vs f32 ref
    assert jnp.allclose(out, ref, atol=3e-2, rtol=3e-2), "mismatch vs reference"

    print("KERNEL_OK")
</pallas_src>

<mosaic_0001>
module attributes {stable_mosaic.version = 11 : i64} {
  func.func @kernel(%arg0: i32, %arg1: memref<1x8x32xbf16, #tpu.memory_space<vmem>>, %arg2: memref<32x96xbf16, #tpu.memory_space<vmem>>, %arg3: memref<1x96xf32, #tpu.memory_space<vmem>>, %arg4: memref<32x32xbf16, #tpu.memory_space<vmem>>, %arg5: memref<1x32xf32, #tpu.memory_space<vmem>>, %arg6: memref<1x8x32xf32, #tpu.memory_space<vmem>>) attributes {dimension_semantics = [#tpu.dimension_semantics<parallel>], iteration_bounds = array<i64: 2>, scalar_prefetch = 0 : i64, scratch_operands = 0 : i64, tpu.core_type = #tpu.core_type<tc>, window_params = [{transform_indices = @transform_0, window_bounds = array<i64: 1, 8, 32>}, {pipeline_mode = #tpu.pipeline_mode<synchronous>, transform_indices = @transform_1, window_bounds = array<i64: 32, 96>}, {pipeline_mode = #tpu.pipeline_mode<synchronous>, transform_indices = @transform_2, window_bounds = array<i64: 1, 96>}, {pipeline_mode = #tpu.pipeline_mode<synchronous>, transform_indices = @transform_3, window_bounds = array<i64: 32, 32>}, {pipeline_mode = #tpu.pipeline_mode<synchronous>, transform_indices = @transform_4, window_bounds = array<i64: 1, 32>}, {transform_indices = @transform_5, window_bounds = array<i64: 1, 8, 32>}]} {
    %c0 = arith.constant 0 : index
    %c0_0 = arith.constant 0 : index
    %c0_1 = arith.constant 0 : index
    %0 = vector.load %arg1[%c0, %c0_0, %c0_1] : memref<1x8x32xbf16, #tpu.memory_space<vmem>>, vector<1x8x32xbf16>
    %1 = vector.shape_cast %0 : vector<1x8x32xbf16> to vector<8x32xbf16>
    %c0_2 = arith.constant 0 : index
    %c0_3 = arith.constant 0 : index
    %2 = vector.load %arg2[%c0_2, %c0_3] : memref<32x96xbf16, #tpu.memory_space<vmem>>, vector<32x96xbf16>
    %cst = arith.constant dense<0.000000e+00> : vector<8x96xf32>
    %3 = tpu.matmul %1, %2, %cst {dimension_numbers = #tpu.dot_dimension_numbers<[1], [0], [0], [1], [0, 0, 1, 1], [], []>} : vector<8x32xbf16>, vector<32x96xbf16>, vector<8x96xf32> -> vector<8x96xf32>
    %c0_4 = arith.constant 0 : index
    %c0_5 = arith.constant 0 : index
    %4 = vector.load %arg3[%c0_4, %c0_5] : memref<1x96xf32, #tpu.memory_space<vmem>>, vector<1x96xf32>
    %5 = vector.broadcast %4 : vector<1x96xf32> to vector<8x96xf32>
    %6 = arith.addf %3, %5 : vector<8x96xf32>
    %7 = vector.extract_strided_slice %6 {offsets = [0, 0], sizes = [8, 32], strides = [1, 1]} : vector<8x96xf32> to vector<8x32xf32>
    %8 = vector.shape_cast %7 : vector<8x32xf32> to vector<1x8x32xf32>
    %9 = arith.truncf %8 : vector<1x8x32xf32> to vector<1x8x32xbf16>
    %10 = vector.extract_strided_slice %6 {offsets = [0, 32], sizes = [8, 32], strides = [1, 1]} : vector<8x96xf32> to vector<8x32xf32>
    %11 = vector.shape_cast %10 : vector<8x32xf32> to vector<1x8x32xf32>
    %12 = arith.truncf %11 : vector<1x8x32xf32> to vector<1x8x32xbf16>
    %13 = vector.extract_strided_slice %6 {offsets = [0, 64], sizes = [8, 32], strides = [1, 1]} : vector<8x96xf32> to vector<8x32xf32>
    %14 = vector.shape_cast %13 : vector<8x32xf32> to vector<1x8x32xf32>
    %15 = arith.truncf %14 : vector<1x8x32xf32> to vector<1x8x32xbf16>
    %16 = tpu.iota {dimensions = array<i32: 0>} : vector<8x8xi32>
    %17 = tpu.iota {dimensions = array<i32: 1>} : vector<8x8xi32>
    %18 = arith.cmpi sle, %17, %16 : vector<8x8xi32>
    %c5_i32 = arith.constant 5 : i32
    %19 = vector.broadcast %c5_i32 : i32 to vector<8x8xi32>
    %20 = arith.cmpi slt, %17, %19 : vector<8x8xi32>
    %21 = arith.ori %18, %20 : vector<8x8xi1>
    %cst_6 = arith.constant 0.000000e+00 : f32
    %cst_7 = arith.constant -1.000000e+30 : f32
    %22 = vector.broadcast %cst_6 : f32 to vector<8x8xf32>
    %23 = vector.broadcast %cst_7 : f32 to vector<8x8xf32>
    %24 = arith.select %21, %22, %23 : vector<8x8xi1>, vector<8x8xf32>
    %25 = vector.extract_strided_slice %9 {offsets = [0, 0, 0], sizes = [1, 8, 8], strides = [1, 1, 1]} : vector<1x8x32xbf16> to vector<1x8x8xbf16>
    %26 = vector.extract_strided_slice %12 {offsets = [0, 0, 0], sizes = [1, 8, 8], strides = [1, 1, 1]} : vector<1x8x32xbf16> to vector<1x8x8xbf16>
    %27 = vector.extract_strided_slice %15 {offsets = [0, 0, 0], sizes = [1, 8, 8], strides = [1, 1, 1]} : vector<1x8x32xbf16> to vector<1x8x8xbf16>
    "tpu.trace_start"() <{level = 10 : i32, message = "bqd,bkd->bqk"}> : () -> ()
    %cst_8 = arith.constant dense<0.000000e+00> : vector<1x8x8xf32>
    %28 = tpu.matmul %25, %26, %cst_8 {dimension_numbers = #tpu.dot_dimension_numbers<[2], [2], [1], [1], [0, 0, 0, 1, 1, 1], [0], [0]>} : vector<1x8x8xbf16>, vector<1x8x8xbf16>, vector<1x8x8xf32> -> vector<1x8x8xf32>
    "tpu.trace_stop"() : () -> ()
    %29 = vector.shape_cast %24 : vector<8x8xf32> to vector<1x8x8xf32>
    %30 = arith.addf %28, %29 : vector<1x8x8xf32>
    %cst_9 = arith.constant dense<0xFF800000> : vector<1x8xf32>
    %31 = vector.multi_reduction <maximumf>, %30, %cst_9 [2] : vector<1x8x8xf32> to vector<1x8xf32>
    %32 = vector.shape_cast %31 : vector<1x8xf32> to vector<1x8x1xf32>
    %33 = vector.broadcast %32 : vector<1x8x1xf32> to vector<1x8x8xf32>
    %34 = arith.subf %30, %33 : vector<1x8x8xf32>
    %35 = math.exp %34 : vector<1x8x8xf32>
    %cst_10 = arith.constant dense<0.000000e+00> : vector<1x8xf32>
    %36 = vector.multi_reduction <add>, %35, %cst_10 [2] : vector<1x8x8xf32> to vector<1x8xf32>
    %37 = vector.shape_cast %36 : vector<1x8xf32> to vector<1x8x1xf32>
    %38 = tpu.reciprocal %37 {approx = true} : vector<1x8x1xf32> -> vector<1x8x1xf32>
    %39 = vector.broadcast %38 : vector<1x8x1xf32> to vector<1x8x8xf32>
    %40 = arith.mulf %35, %39 : vector<1x8x8xf32>
    %41 = arith.truncf %40 : vector<1x8x8xf32> to vector<1x8x8xbf16>
    "tpu.trace_start"() <{level = 10 : i32, message = "bqk,bkd->bqd"}> : () -> ()
    %cst_11 = arith.constant dense<0.000000e+00> : vector<1x8x8xf32>
    %42 = tpu.matmul %41, %27, %cst_11 {dimension_numbers = #tpu.dot_dimension_numbers<[2], [1], [1], [2], [0, 0, 0, 1, 1, 2], [0], [0]>} : vector<1x8x8xbf16>, vector<1x8x8xbf16>, vector<1x8x8xf32> -> vector<1x8x8xf32>
    "tpu.trace_stop"() : () -> ()
    %43 = vector.extract_strided_slice %9 {offsets = [0, 0, 8], sizes = [1, 8, 8], strides = [1, 1, 1]} : vector<1x8x32xbf16> to vector<1x8x8xbf16>
    %44 = vector.extract_strided_slice %12 {offsets = [0, 0, 8], sizes = [1, 8, 8], strides = [1, 1, 1]} : vector<1x8x32xbf16> to vector<1x8x8xbf16>
    %45 = vector.extract_strided_slice %15 {offsets = [0, 0, 8], sizes = [1, 8, 8], strides = [1, 1, 1]} : vector<1x8x32xbf16> to vector<1x8x8xbf16>
    "tpu.trace_start"() <{level = 10 : i32, message = "bqd,bkd->bqk"}> : () -> ()
    %cst_12 = arith.constant dense<0.000000e+00> : vector<1x8x8xf32>
    %46 = tpu.matmul %43, %44, %cst_12 {dimension_numbers = #tpu.dot_dimension_numbers<[2], [2], [1], [1], [0, 0, 0, 1, 1, 1], [0], [0]>} : vector<1x8x8xbf16>, vector<1x8x8xbf16>, vector<1x8x8xf32> -> vector<1x8x8xf32>
    "tpu.trace_stop"() : () -> ()
    %47 = vector.shape_cast %24 : vector<8x8xf32> to vector<1x8x8xf32>
    %48 = arith.addf %46, %47 : vector<1x8x8xf32>
    %cst_13 = arith.constant dense<0xFF800000> : vector<1x8xf32>
    %49 = vector.multi_reduction <maximumf>, %48, %cst_13 [2] : vector<1x8x8xf32> to vector<1x8xf32>
    %50 = vector.shape_cast %49 : vector<1x8xf32> to vector<1x8x1xf32>
    %51 = vector.broadcast %50 : vector<1x8x1xf32> to vector<1x8x8xf32>
    %52 = arith.subf %48, %51 : vector<1x8x8xf32>
    %53 = math.exp %52 : vector<1x8x8xf32>
    %cst_14 = arith.constant dense<0.000000e+00> : vector<1x8xf32>
    %54 = vector.multi_reduction <add>, %53, %cst_14 [2] : vector<1x8x8xf32> to vector<1x8xf32>
    %55 = vector.shape_cast %54 : vector<1x8xf32> to vector<1x8x1xf32>
    %56 = tpu.reciprocal %55 {approx = true} : vector<1x8x1xf32> -> vector<1x8x1xf32>
    %57 = vector.broadcast %56 : vector<1x8x1xf32> to vector<1x8x8xf32>
    %58 = arith.mulf %53, %57 : vector<1x8x8xf32>
    %59 = arith.truncf %58 : vector<1x8x8xf32> to vector<1x8x8xbf16>
    "tpu.trace_start"() <{level = 10 : i32, message = "bqk,bkd->bqd"}> : () -> ()
    %cst_15 = arith.constant dense<0.000000e+00> : vector<1x8x8xf32>
    %60 = tpu.matmul %59, %45, %cst_15 {dimension_numbers = #tpu.dot_dimension_numbers<[2], [1], [1], [2], [0, 0, 0, 1, 1, 2], [0], [0]>} : vector<1x8x8xbf16>, vector<1x8x8xbf16>, vector<1x8x8xf32> -> vector<1x8x8xf32>
    "tpu.trace_stop"() : () -> ()
    %61 = vector.extract_strided_slice %9 {offsets = [0, 0, 16], sizes = [1, 8, 8], strides = [1, 1, 1]} : vector<1x8x32xbf16> to vector<1x8x8xbf16>
    %62 = vector.extract_strided_slice %12 {offsets = [0, 0, 16], sizes = [1, 8, 8], strides = [1, 1, 1]} : vector<1x8x32xbf16> to vector<1x8x8xbf16>
    %63 = vector.extract_strided_slice %15 {offsets = [0, 0, 16], sizes = [1, 8, 8], strides = [1, 1, 1]} : vector<1x8x32xbf16> to vector<1x8x8xbf16>
    "tpu.trace_start"() <{level = 10 : i32, message = "bqd,bkd->bqk"}> : () -> ()
    %cst_16 = arith.constant dense<0.000000e+00> : vector<1x8x8xf32>
    %64 = tpu.matmul %61, %62, %cst_16 {dimension_numbers = #tpu.dot_dimension_numbers<[2], [2], [1], [1], [0, 0, 0, 1, 1, 1], [0], [0]>} : vector<1x8x8xbf16>, vector<1x8x8xbf16>, vector<1x8x8xf32> -> vector<1x8x8xf32>
    "tpu.trace_stop"() : () -> ()
    %65 = vector.shape_cast %24 : vector<8x8xf32> to vector<1x8x8xf32>
    %66 = arith.addf %64, %65 : vector<1x8x8xf32>
    %cst_17 = arith.constant dense<0xFF800000> : vector<1x8xf32>
    %67 = vector.multi_reduction <maximumf>, %66, %cst_17 [2] : vector<1x8x8xf32> to vector<1x8xf32>
    %68 = vector.shape_cast %67 : vector<1x8xf32> to vector<1x8x1xf32>
    %69 = vector.broadcast %68 : vector<1x8x1xf32> to vector<1x8x8xf32>
    %70 = arith.subf %66, %69 : vector<1x8x8xf32>
    %71 = math.exp %70 : vector<1x8x8xf32>
    %cst_18 = arith.constant dense<0.000000e+00> : vector<1x8xf32>
    %72 = vector.multi_reduction <add>, %71, %cst_18 [2] : vector<1x8x8xf32> to vector<1x8xf32>
    %73 = vector.shape_cast %72 : vector<1x8xf32> to vector<1x8x1xf32>
    %74 = tpu.reciprocal %73 {approx = true} : vector<1x8x1xf32> -> vector<1x8x1xf32>
    %75 = vector.broadcast %74 : vector<1x8x1xf32> to vector<1x8x8xf32>
    %76 = arith.mulf %71, %75 : vector<1x8x8xf32>
    %77 = arith.truncf %76 : vector<1x8x8xf32> to vector<1x8x8xbf16>
    "tpu.trace_start"() <{level = 10 : i32, message = "bqk,bkd->bqd"}> : () -> ()
    %cst_19 = arith.constant dense<0.000000e+00> : vector<1x8x8xf32>
    %78 = tpu.matmul %77, %63, %cst_19 {dimension_numbers = #tpu.dot_dimension_numbers<[2], [1], [1], [2], [0, 0, 0, 1, 1, 2], [0], [0]>} : vector<1x8x8xbf16>, vector<1x8x8xbf16>, vector<1x8x8xf32> -> vector<1x8x8xf32>
    "tpu.trace_stop"() : () -> ()
    %79 = vector.extract_strided_slice %9 {offsets = [0, 0, 24], sizes = [1, 8, 8], strides = [1, 1, 1]} : vector<1x8x32xbf16> to vector<1x8x8xbf16>
    %80 = vector.extract_strided_slice %12 {offsets = [0, 0, 24], sizes = [1, 8, 8], strides = [1, 1, 1]} : vector<1x8x32xbf16> to vector<1x8x8xbf16>
    %81 = vector.extract_strided_slice %15 {offsets = [0, 0, 24], sizes = [1, 8, 8], strides = [1, 1, 1]} : vector<1x8x32xbf16> to vector<1x8x8xbf16>
    "tpu.trace_start"() <{level = 10 : i32, message = "bqd,bkd->bqk"}> : () -> ()
    %cst_20 = arith.constant dense<0.000000e+00> : vector<1x8x8xf32>
    %82 = tpu.matmul %79, %80, %cst_20 {dimension_numbers = #tpu.dot_dimension_numbers<[2], [2], [1], [1], [0, 0, 0, 1, 1, 1], [0], [0]>} : vector<1x8x8xbf16>, vector<1x8x8xbf16>, vector<1x8x8xf32> -> vector<1x8x8xf32>
    "tpu.trace_stop"() : () -> ()
    %83 = vector.shape_cast %24 : vector<8x8xf32> to vector<1x8x8xf32>
    %84 = arith.addf %82, %83 : vector<1x8x8xf32>
    %cst_21 = arith.constant dense<0xFF800000> : vector<1x8xf32>
    %85 = vector.multi_reduction <maximumf>, %84, %cst_21 [2] : vector<1x8x8xf32> to vector<1x8xf32>
    %86 = vector.shape_cast %85 : vector<1x8xf32> to vector<1x8x1xf32>
    %87 = vector.broadcast %86 : vector<1x8x1xf32> to vector<1x8x8xf32>
    %88 = arith.subf %84, %87 : vector<1x8x8xf32>
    %89 = math.exp %88 : vector<1x8x8xf32>
    %cst_22 = arith.constant dense<0.000000e+00> : vector<1x8xf32>
    %90 = vector.multi_reduction <add>, %89, %cst_22 [2] : vector<1x8x8xf32> to vector<1x8xf32>
    %91 = vector.shape_cast %90 : vector<1x8xf32> to vector<1x8x1xf32>
    %92 = tpu.reciprocal %91 {approx = true} : vector<1x8x1xf32> -> vector<1x8x1xf32>
    %93 = vector.broadcast %92 : vector<1x8x1xf32> to vector<1x8x8xf32>
    %94 = arith.mulf %89, %93 : vector<1x8x8xf32>
    %95 = arith.truncf %94 : vector<1x8x8xf32> to vector<1x8x8xbf16>
    "tpu.trace_start"() <{level = 10 : i32, message = "bqk,bkd->bqd"}> : () -> ()
    %cst_23 = arith.constant dense<0.000000e+00> : vector<1x8x8xf32>
    %96 = tpu.matmul %95, %81, %cst_23 {dimension_numbers = #tpu.dot_dimension_numbers<[2], [1], [1], [2], [0, 0, 0, 1, 1, 2], [0], [0]>} : vector<1x8x8xbf16>, vector<1x8x8xbf16>, vector<1x8x8xf32> -> vector<1x8x8xf32>
    "tpu.trace_stop"() : () -> ()
    %97 = tpu.concatenate %42, %60, %78, %96 in 2 : vector<1x8x8xf32>, vector<1x8x8xf32>, vector<1x8x8xf32>, vector<1x8x8xf32> -> vector<1x8x32xf32>
    %98 = vector.shape_cast %97 : vector<1x8x32xf32> to vector<8x32xf32>
    %99 = arith.truncf %98 : vector<8x32xf32> to vector<8x32xbf16>
    %c0_24 = arith.constant 0 : index
    %c0_25 = arith.constant 0 : index
    %100 = vector.load %arg4[%c0_24, %c0_25] : memref<32x32xbf16, #tpu.memory_space<vmem>>, vector<32x32xbf16>
    %cst_26 = arith.constant dense<0.000000e+00> : vector<8x32xf32>
    %101 = tpu.matmul %99, %100, %cst_26 {dimension_numbers = #tpu.dot_dimension_numbers<[1], [0], [0], [1], [0, 0, 1, 1], [], []>} : vector<8x32xbf16>, vector<32x32xbf16>, vector<8x32xf32> -> vector<8x32xf32>
    %c0_27 = arith.constant 0 : index
    %c0_28 = arith.constant 0 : index
    %102 = vector.load %arg5[%c0_27, %c0_28] : memref<1x32xf32, #tpu.memory_space<vmem>>, vector<1x32xf32>
    %103 = vector.broadcast %102 : vector<1x32xf32> to vector<8x32xf32>
    %104 = arith.addf %101, %103 : vector<8x32xf32>
    %105 = vector.shape_cast %104 : vector<8x32xf32> to vector<1x8x32xf32>
    %c0_29 = arith.constant 0 : index
    %c0_30 = arith.constant 0 : index
    %c0_31 = arith.constant 0 : index
    %106 = vector.load %arg6[%c0_29, %c0_30, %c0_31] : memref<1x8x32xf32, #tpu.memory_space<vmem>>, vector<1x8x32xf32>
    tpu.vector_store %arg6[%c0_29, %c0_30, %c0_31], %105 {strides = array<i32>} : memref<1x8x32xf32, #tpu.memory_space<vmem>>, vector<1x8x32xf32>,
    return
  }
  func.func @transform_0(%arg0: i32) -> (i32, i32, i32) {
    %c0_i32 = arith.constant 0 : i32
    %c0_i32_0 = arith.constant 0 : i32
    %c0_i32_1 = arith.constant 0 : i32
    return %arg0, %c0_i32, %c0_i32_0 : i32, i32, i32
  }
  func.func @transform_1(%arg0: i32) -> (i32, i32) {
    %c0_i32 = arith.constant 0 : i32
    %c0_i32_0 = arith.constant 0 : i32
    %c0_i32_1 = arith.constant 0 : i32
    return %c0_i32, %c0_i32_0 : i32, i32
  }
  func.func @transform_2(%arg0: i32) -> (i32, i32) {
    %c0_i32 = arith.constant 0 : i32
    %c0_i32_0 = arith.constant 0 : i32
    %c0_i32_1 = arith.constant 0 : i32
    return %c0_i32, %c0_i32_0 : i32, i32
  }
  func.func @transform_3(%arg0: i32) -> (i32, i32) {
    %c0_i32 = arith.constant 0 : i32
    %c0_i32_0 = arith.constant 0 : i32
    %c0_i32_1 = arith.constant 0 : i32
    return %c0_i32, %c0_i32_0 : i32, i32
  }
  func.func @transform_4(%arg0: i32) -> (i32, i32) {
    %c0_i32 = arith.constant 0 : i32
    %c0_i32_0 = arith.constant 0 : i32
    %c0_i32_1 = arith.constant 0 : i32
    return %c0_i32, %c0_i32_0 : i32, i32
  }
  func.func @transform_5(%arg0: i32) -> (i32, i32, i32) {
    %c0_i32 = arith.constant 0 : i32
    %c0_i32_0 = arith.constant 0 : i32
    %c0_i32_1 = arith.constant 0 : i32
    return %arg0, %c0_i32, %c0_i32_0 : i32, i32, i32
  }
}

module attributes {stable_mosaic.version = 11 : i64} {
  func.func @kernel(%arg0: i32, %arg1: memref<1x8x32xbf16, #tpu.memory_space<vmem>>, %arg2: memref<32x96xbf16, #tpu.memory_space<vmem>>, %arg3: memref<1x96xf32, #tpu.memory_space<vmem>>, %arg4: memref<32x32xbf16, #tpu.memory_space<vmem>>, %arg5: memref<1x32xf32, #tpu.memory_space<vmem>>, %arg6: memref<1x8x32xf32, #tpu.memory_space<vmem>>) attributes {dimension_semantics = [#tpu.dimension_semantics<parallel>], iteration_bounds = array<i64: 2>, scalar_prefetch = 0 : i64, scratch_operands = 0 : i64, tpu.core_type = #tpu.core_type<tc>, window_params = [{transform_indices = @transform_0, window_bounds = array<i64: 1, 8, 32>}, {pipeline_mode = #tpu.pipeline_mode<synchronous>, transform_indices = @transform_1, window_bounds = array<i64: 32, 96>}, {pipeline_mode = #tpu.pipeline_mode<synchronous>, transform_indices = @transform_2, window_bounds = array<i64: 1, 96>}, {pipeline_mode = #tpu.pipeline_mode<synchronous>, transform_indices = @transform_3, window_bounds = array<i64: 32, 32>}, {pipeline_mode = #tpu.pipeline_mode<synchronous>, transform_indices = @transform_4, window_bounds = array<i64: 1, 32>}, {transform_indices = @transform_5, window_bounds = array<i64: 1, 8, 32>}]} {
    %c0 = arith.constant 0 : index
    %c0_0 = arith.constant 0 : index
    %c0_1 = arith.constant 0 : index
    %0 = vector.load %arg1[%c0, %c0_0, %c0_1] : memref<1x8x32xbf16, #tpu.memory_space<vmem>>, vector<1x8x32xbf16>
    %1 = vector.shape_cast %0 : vector<1x8x32xbf16> to vector<8x32xbf16>
    %c0_2 = arith.constant 0 : index
    %c0_3 = arith.constant 0 : index
    %2 = vector.load %arg2[%c0_2, %c0_3] : memref<32x96xbf16, #tpu.memory_space<vmem>>, vector<32x96xbf16>
    %cst = arith.constant dense<0.000000e+00> : vector<8x96xf32>
    %3 = tpu.matmul %1, %2, %cst {dimension_numbers = #tpu.dot_dimension_numbers<[1], [0], [0], [1], [0, 0, 1, 1], [], []>} : vector<8x32xbf16>, vector<32x96xbf16>, vector<8x96xf32> -> vector<8x96xf32>
    %c0_4 = arith.constant 0 : index
    %c0_5 = arith.constant 0 : index
    %4 = vector.load %arg3[%c0_4, %c0_5] : memref<1x96xf32, #tpu.memory_space<vmem>>, vector<1x96xf32>
    %5 = vector.broadcast %4 : vector<1x96xf32> to vector<8x96xf32>
    %6 = arith.addf %3, %5 : vector<8x96xf32>
    %7 = vector.extract_strided_slice %6 {offsets = [0, 0], sizes = [8, 32], strides = [1, 1]} : vector<8x96xf32> to vector<8x32xf32>
    %8 = vector.shape_cast %7 : vector<8x32xf32> to vector<1x8x32xf32>
    %9 = arith.truncf %8 : vector<1x8x32xf32> to vector<1x8x32xbf16>
    %10 = vector.extract_strided_slice %6 {offsets = [0, 32], sizes = [8, 32], strides = [1, 1]} : vector<8x96xf32> to vector<8x32xf32>
    %11 = vector.shape_cast %10 : vector<8x32xf32> to vector<1x8x32xf32>
    %12 = arith.truncf %11 : vector<1x8x32xf32> to vector<1x8x32xbf16>
    %13 = vector.extract_strided_slice %6 {offsets = [0, 64], sizes = [8, 32], strides = [1, 1]} : vector<8x96xf32> to vector<8x32xf32>
    %14 = vector.shape_cast %13 : vector<8x32xf32> to vector<1x8x32xf32>
    %15 = arith.truncf %14 : vector<1x8x32xf32> to vector<1x8x32xbf16>
    %16 = tpu.iota {dimensions = array<i32: 0>} : vector<8x8xi32>
    %17 = tpu.iota {dimensions = array<i32: 1>} : vector<8x8xi32>
    %18 = arith.cmpi sle, %17, %16 : vector<8x8xi32>
    %c5_i32 = arith.constant 5 : i32
    %19 = vector.broadcast %c5_i32 : i32 to vector<8x8xi32>
    %20 = arith.cmpi slt, %17, %19 : vector<8x8xi32>
    %21 = arith.ori %18, %20 : vector<8x8xi1>
    %cst_6 = arith.constant 0.000000e+00 : f32
    %cst_7 = arith.constant -1.000000e+30 : f32
    %22 = vector.broadcast %cst_6 : f32 to vector<8x8xf32>
    %23 = vector.broadcast %cst_7 : f32 to vector<8x8xf32>
    %24 = arith.select %21, %22, %23 : vector<8x8xi1>, vector<8x8xf32>
    %25 = vector.extract_strided_slice %9 {offsets = [0, 0, 0], sizes = [1, 8, 8], strides = [1, 1, 1]} : vector<1x8x32xbf16> to vector<1x8x8xbf16>
    %26 = vector.extract_strided_slice %12 {offsets = [0, 0, 0], sizes = [1, 8, 8], strides = [1, 1, 1]} : vector<1x8x32xbf16> to vector<1x8x8xbf16>
    %27 = vector.extract_strided_slice %15 {offsets = [0, 0, 0], sizes = [1, 8, 8], strides = [1, 1, 1]} : vector<1x8x32xbf16> to vector<1x8x8xbf16>
    "tpu.trace_start"() <{level = 10 : i32, message = "bqd,bkd->bqk"}> : () -> ()
    %cst_8 = arith.constant dense<0.000000e+00> : vector<1x8x8xf32>
    %28 = tpu.matmul %25, %26, %cst_8 {dimension_numbers = #tpu.dot_dimension_numbers<[2], [2], [1], [1], [0, 0, 0, 1, 1, 1], [0], [0]>} : vector<1x8x8xbf16>, vector<1x8x8xbf16>, vector<1x8x8xf32> -> vector<1x8x8xf32>
    "tpu.trace_stop"() : () -> ()
    %29 = vector.shape_cast %24 : vector<8x8xf32> to vector<1x8x8xf32>
    %30 = arith.addf %28, %29 : vector<1x8x8xf32>
    %cst_9 = arith.constant dense<0xFF800000> : vector<1x8xf32>
    %31 = vector.multi_reduction <maximumf>, %30, %cst_9 [2] : vector<1x8x8xf32> to vector<1x8xf32>
    %32 = vector.shape_cast %31 : vector<1x8xf32> to vector<1x8x1xf32>
    %33 = vector.broadcast %32 : vector<1x8x1xf32> to vector<1x8x8xf32>
    %34 = arith.subf %30, %33 : vector<1x8x8xf32>
    %35 = math.exp %34 : vector<1x8x8xf32>
    %cst_10 = arith.constant dense<0.000000e+00> : vector<1x8xf32>
    %36 = vector.multi_reduction <add>, %35, %cst_10 [2] : vector<1x8x8xf32> to vector<1x8xf32>
    %37 = vector.shape_cast %36 : vector<1x8xf32> to vector<1x8x1xf32>
    %38 = tpu.reciprocal %37 {approx = true} : vector<1x8x1xf32> -> vector<1x8x1xf32>
    %39 = vector.broadcast %38 : vector<1x8x1xf32> to vector<1x8x8xf32>
    %40 = arith.mulf %35, %39 : vector<1x8x8xf32>
    %41 = arith.truncf %40 : vector<1x8x8xf32> to vector<1x8x8xbf16>
    "tpu.trace_start"() <{level = 10 : i32, message = "bqk,bkd->bqd"}> : () -> ()
    %cst_11 = arith.constant dense<0.000000e+00> : vector<1x8x8xf32>
    %42 = tpu.matmul %41, %27, %cst_11 {dimension_numbers = #tpu.dot_dimension_numbers<[2], [1], [1], [2], [0, 0, 0, 1, 1, 2], [0], [0]>} : vector<1x8x8xbf16>, vector<1x8x8xbf16>, vector<1x8x8xf32> -> vector<1x8x8xf32>
    "tpu.trace_stop"() : () -> ()
    %43 = vector.extract_strided_slice %9 {offsets = [0, 0, 8], sizes = [1, 8, 8], strides = [1, 1, 1]} : vector<1x8x32xbf16> to vector<1x8x8xbf16>
    %44 = vector.extract_strided_slice %12 {offsets = [0, 0, 8], sizes = [1, 8, 8], strides = [1, 1, 1]} : vector<1x8x32xbf16> to vector<1x8x8xbf16>
    %45 = vector.extract_strided_slice %15 {offsets = [0, 0, 8], sizes = [1, 8, 8], strides = [1, 1, 1]} : vector<1x8x32xbf16> to vector<1x8x8xbf16>
    "tpu.trace_start"() <{level = 10 : i32, message = "bqd,bkd->bqk"}> : () -> ()
    %cst_12 = arith.constant dense<0.000000e+00> : vector<1x8x8xf32>
    %46 = tpu.matmul %43, %44, %cst_12 {dimension_numbers = #tpu.dot_dimension_numbers<[2], [2], [1], [1], [0, 0, 0, 1, 1, 1], [0], [0]>} : vector<1x8x8xbf16>, vector<1x8x8xbf16>, vector<1x8x8xf32> -> vector<1x8x8xf32>
    "tpu.trace_stop"() : () -> ()
    %47 = vector.shape_cast %24 : vector<8x8xf32> to vector<1x8x8xf32>
    %48 = arith.addf %46, %47 : vector<1x8x8xf32>
    %cst_13 = arith.constant dense<0xFF800000> : vector<1x8xf32>
    %49 = vector.multi_reduction <maximumf>, %48, %cst_13 [2] : vector<1x8x8xf32> to vector<1x8xf32>
    %50 = vector.shape_cast %49 : vector<1x8xf32> to vector<1x8x1xf32>
    %51 = vector.broadcast %50 : vector<1x8x1xf32> to vector<1x8x8xf32>
    %52 = arith.subf %48, %51 : vector<1x8x8xf32>
    %53 = math.exp %52 : vector<1x8x8xf32>
    %cst_14 = arith.constant dense<0.000000e+00> : vector<1x8xf32>
    %54 = vector.multi_reduction <add>, %53, %cst_14 [2] : vector<1x8x8xf32> to vector<1x8xf32>
    %55 = vector.shape_cast %54 : vector<1x8xf32> to vector<1x8x1xf32>
    %56 = tpu.reciprocal %55 {approx = true} : vector<1x8x1xf32> -> vector<1x8x1xf32>
    %57 = vector.broadcast %56 : vector<1x8x1xf32> to vector<1x8x8xf32>
    %58 = arith.mulf %53, %57 : vector<1x8x8xf32>
    %59 = arith.truncf %58 : vector<1x8x8xf32> to vector<1x8x8xbf16>
    "tpu.trace_start"() <{level = 10 : i32, message = "bqk,bkd->bqd"}> : () -> ()
    %cst_15 = arith.constant dense<0.000000e+00> : vector<1x8x8xf32>
    %60 = tpu.matmul %59, %45, %cst_15 {dimension_numbers = #tpu.dot_dimension_numbers<[2], [1], [1], [2], [0, 0, 0, 1, 1, 2], [0], [0]>} : vector<1x8x8xbf16>, vector<1x8x8xbf16>, vector<1x8x8xf32> -> vector<1x8x8xf32>
    "tpu.trace_stop"() : () -> ()
    %61 = vector.extract_strided_slice %9 {offsets = [0, 0, 16], sizes = [1, 8, 8], strides = [1, 1, 1]} : vector<1x8x32xbf16> to vector<1x8x8xbf16>
    %62 = vector.extract_strided_slice %12 {offsets = [0, 0, 16], sizes = [1, 8, 8], strides = [1, 1, 1]} : vector<1x8x32xbf16> to vector<1x8x8xbf16>
    %63 = vector.extract_strided_slice %15 {offsets = [0, 0, 16], sizes = [1, 8, 8], strides = [1, 1, 1]} : vector<1x8x32xbf16> to vector<1x8x8xbf16>
    "tpu.trace_start"() <{level = 10 : i32, message = "bqd,bkd->bqk"}> : () -> ()
    %cst_16 = arith.constant dense<0.000000e+00> : vector<1x8x8xf32>
    %64 = tpu.matmul %61, %62, %cst_16 {dimension_numbers = #tpu.dot_dimension_numbers<[2], [2], [1], [1], [0, 0, 0, 1, 1, 1], [0], [0]>} : vector<1x8x8xbf16>, vector<1x8x8xbf16>, vector<1x8x8xf32> -> vector<1x8x8xf32>
    "tpu.trace_stop"() : () -> ()
    %65 = vector.shape_cast %24 : vector<8x8xf32> to vector<1x8x8xf32>
    %66 = arith.addf %64, %65 : vector<1x8x8xf32>
    %cst_17 = arith.constant dense<0xFF800000> : vector<1x8xf32>
    %67 = vector.multi_reduction <maximumf>, %66, %cst_17 [2] : vector<1x8x8xf32> to vector<1x8xf32>
    %68 = vector.shape_cast %67 : vector<1x8xf32> to vector<1x8x1xf32>
    %69 = vector.broadcast %68 : vector<1x8x1xf32> to vector<1x8x8xf32>
    %70 = arith.subf %66, %69 : vector<1x8x8xf32>
    %71 = math.exp %70 : vector<1x8x8xf32>
    %cst_18 = arith.constant dense<0.000000e+00> : vector<1x8xf32>
    %72 = vector.multi_reduction <add>, %71, %cst_18 [2] : vector<1x8x8xf32> to vector<1x8xf32>
    %73 = vector.shape_cast %72 : vector<1x8xf32> to vector<1x8x1xf32>
    %74 = tpu.reciprocal %73 {approx = true} : vector<1x8x1xf32> -> vector<1x8x1xf32>
    %75 = vector.broadcast %74 : vector<1x8x1xf32> to vector<1x8x8xf32>
    %76 = arith.mulf %71, %75 : vector<1x8x8xf32>
    %77 = arith.truncf %76 : vector<1x8x8xf32> to vector<1x8x8xbf16>
    "tpu.trace_start"() <{level = 10 : i32, message = "bqk,bkd->bqd"}> : () -> ()
    %cst_19 = arith.constant dense<0.000000e+00> : vector<1x8x8xf32>
    %78 = tpu.matmul %77, %63, %cst_19 {dimension_numbers = #tpu.dot_dimension_numbers<[2], [1], [1], [2], [0, 0, 0, 1, 1, 2], [0], [0]>} : vector<1x8x8xbf16>, vector<1x8x8xbf16>, vector<1x8x8xf32> -> vector<1x8x8xf32>
    "tpu.trace_stop"() : () -> ()
    %79 = vector.extract_strided_slice %9 {offsets = [0, 0, 24], sizes = [1, 8, 8], strides = [1, 1, 1]} : vector<1x8x32xbf16> to vector<1x8x8xbf16>
    %80 = vector.extract_strided_slice %12 {offsets = [0, 0, 24], sizes = [1, 8, 8], strides = [1, 1, 1]} : vector<1x8x32xbf16> to vector<1x8x8xbf16>
    %81 = vector.extract_strided_slice %15 {offsets = [0, 0, 24], sizes = [1, 8, 8], strides = [1, 1, 1]} : vector<1x8x32xbf16> to vector<1x8x8xbf16>
    "tpu.trace_start"() <{level = 10 : i32, message = "bqd,bkd->bqk"}> : () -> ()
    %cst_20 = arith.constant dense<0.000000e+00> : vector<1x8x8xf32>
    %82 = tpu.matmul %79, %80, %cst_20 {dimension_numbers = #tpu.dot_dimension_numbers<[2], [2], [1], [1], [0, 0, 0, 1, 1, 1], [0], [0]>} : vector<1x8x8xbf16>, vector<1x8x8xbf16>, vector<1x8x8xf32> -> vector<1x8x8xf32>
    "tpu.trace_stop"() : () -> ()
    %83 = vector.shape_cast %24 : vector<8x8xf32> to vector<1x8x8xf32>
    %84 = arith.addf %82, %83 : vector<1x8x8xf32>
    %cst_21 = arith.constant dense<0xFF800000> : vector<1x8xf32>
    %85 = vector.multi_reduction <maximumf>, %84, %cst_21 [2] : vector<1x8x8xf32> to vector<1x8xf32>
    %86 = vector.shape_cast %85 : vector<1x8xf32> to vector<1x8x1xf32>
    %87 = vector.broadcast %86 : vector<1x8x1xf32> to vector<1x8x8xf32>
    %88 = arith.subf %84, %87 : vector<1x8x8xf32>
    %89 = math.exp %88 : vector<1x8x8xf32>
    %cst_22 = arith.constant dense<0.000000e+00> : vector<1x8xf32>
    %90 = vector.multi_reduction <add>, %89, %cst_22 [2] : vector<1x8x8xf32> to vector<1x8xf32>
    %91 = vector.shape_cast %90 : vector<1x8xf32> to vector<1x8x1xf32>
    %92 = tpu.reciprocal %91 {approx = true} : vector<1x8x1xf32> -> vector<1x8x1xf32>
    %93 = vector.broadcast %92 : vector<1x8x1xf32> to vector<1x8x8xf32>
    %94 = arith.mulf %89, %93 : vector<1x8x8xf32>
    %95 = arith.truncf %94 : vector<1x8x8xf32> to vector<1x8x8xbf16>
    "tpu.trace_start"() <{level = 10 : i32, message = "bqk,bkd->bqd"}> : () -> ()
    %cst_23 = arith.constant dense<0.000000e+00> : vector<1x8x8xf32>
    %96 = tpu.matmul %95, %81, %cst_23 {dimension_numbers = #tpu.dot_dimension_numbers<[2], [1], [1], [2], [0, 0, 0, 1, 1, 2], [0], [0]>} : vector<1x8x8xbf16>, vector<1x8x8xbf16>, vector<1x8x8xf32> -> vector<1x8x8xf32>
    "tpu.trace_stop"() : () -> ()
    %97 = tpu.concatenate %42, %60, %78, %96 in 2 : vector<1x8x8xf32>, vector<1x8x8xf32>, vector<1x8x8xf32>, vector<1x8x8xf32> -> vector<1x8x32xf32>
    %98 = vector.shape_cast %97 : vector<1x8x32xf32> to vector<8x32xf32>
    %99 = arith.truncf %98 : vector<8x32xf32> to vector<8x32xbf16>
    %c0_24 = arith.constant 0 : index
    %c0_25 = arith.constant 0 : index
    %100 = vector.load %arg4[%c0_24, %c0_25] : memref<32x32xbf16, #tpu.memory_space<vmem>>, vector<32x32xbf16>
    %cst_26 = arith.constant dense<0.000000e+00> : vector<8x32xf32>
    %101 = tpu.matmul %99, %100, %cst_26 {dimension_numbers = #tpu.dot_dimension_numbers<[1], [0], [0], [1], [0, 0, 1, 1], [], []>} : vector<8x32xbf16>, vector<32x32xbf16>, vector<8x32xf32> -> vector<8x32xf32>
    %c0_27 = arith.constant 0 : index
    %c0_28 = arith.constant 0 : index
    %102 = vector.load %arg5[%c0_27, %c0_28] : memref<1x32xf32, #tpu.memory_space<vmem>>, vector<1x32xf32>
    %103 = vector.broadcast %102 : vector<1x32xf32> to vector<8x32xf32>
    %104 = arith.addf %101, %103 : vector<8x32xf32>
    %105 = vector.shape_cast %104 : vector<8x32xf32> to vector<1x8x32xf32>
    %c0_29 = arith.constant 0 : index
    %c0_30 = arith.constant 0 : index
    %c0_31 = arith.constant 0 : index
    %106 = vector.load %arg6[%c0_29, %c0_30, %c0_31] : memref<1x8x32xf32, #tpu.memory_space<vmem>>, vector<1x8x32xf32>
    tpu.vector_store %arg6[%c0_29, %c0_30, %c0_31], %105 {strides = array<i32>} : memref<1x8x32xf32, #tpu.memory_space<vmem>>, vector<1x8x32xf32>,
    return
  }
  func.func @transform_0(%arg0: i32) -> (i32, i32, i32) {
    %c0_i32 = arith.constant 0 : i32
    %c0_i32_0 = arith.constant 0 : i32
    %c0_i32_1 = arith.constant 0 : i32
    return %arg0, %c0_i32, %c0_i32_0 : i32, i32, i32
  }
  func.func @transform_1(%arg0: i32) -> (i32, i32) {
    %c0_i32 = arith.constant 0 : i32
    %c0_i32_0 = arith.constant 0 : i32
    %c0_i32_1 = arith.constant 0 : i32
    return %c0_i32, %c0_i32_0 : i32, i32
  }
  func.func @transform_2(%arg0: i32) -> (i32, i32) {
    %c0_i32 = arith.constant 0 : i32
    %c0_i32_0 = arith.constant 0 : i32
    %c0_i32_1 = arith.constant 0 : i32
    return %c0_i32, %c0_i32_0 : i32, i32
  }
  func.func @transform_3(%arg0: i32) -> (i32, i32) {
    %c0_i32 = arith.constant 0 : i32
    %c0_i32_0 = arith.constant 0 : i32
    %c0_i32_1 = arith.constant 0 : i32
    return %c0_i32, %c0_i32_0 : i32, i32
  }
  func.func @transform_4(%arg0: i32) -> (i32, i32) {
    %c0_i32 = arith.constant 0 : i32
    %c0_i32_0 = arith.constant 0 : i32
    %c0_i32_1 = arith.constant 0 : i32
    return %c0_i32, %c0_i32_0 : i32, i32
  }
  func.func @transform_5(%arg0: i32) -> (i32, i32, i32) {
    %c0_i32 = arith.constant 0 : i32
    %c0_i32_0 = arith.constant 0 : i32
    %c0_i32_1 = arith.constant 0 : i32
    return %arg0, %c0_i32, %c0_i32_0 : i32, i32, i32
  }
}

</mosaic_0001>

<bundles_post_ra>
// kernel: tpu_custom_call.1
= control target key start
LH: loop header
LB: loop body
LE: loop exit
PB: predicated region body
PF: predicated region fallthrough
CT: control target
= control target key end

     0   :  { %10 = vsyncpa [#allocation3], 0  ;;  %s1661_s0 = inlined_call_operand.hbm [shape: bf16[2,8,32], index: 0, kind: input, shape index: {}]   ;;  %s1662_s1 = inlined_call_operand.hbm [shape: bf16[32,96], index: 1, kind: input, shape index: {}]   ;;  %s1663_s2 = inlined_call_operand.vmem [shape: f32[1,96], index: 2, kind: input, shape index: {}]   ;;  %s1664_s3 = inlined_call_operand.hbm [shape: bf16[32,32], index: 3, kind: input, shape index: {}]   ;;  %s1665_s4 = inlined_call_operand.vmem [shape: f32[1,32], index: 4, kind: input, shape index: {}]   ;;  %s1666_s5 = inlined_call_operand.hbm [shape: f32[2,8,32], index: 5, kind: output, shape index: {}]  }
   0x1   :  { %12 = vsyncpa [#allocation3 + $0x1], 0 }
   0x2   :  { %13 = vsyncpa [#allocation6], 0 }
   0x3   :  { %14 = vsyncpa [#allocation4], 0 }
   0x4   :  { %16 = vsyncpa [#allocation4 + $0x1], 0  ;;  %s1403_s18 = smov 0   ;;  %s1405_s19 = smov 0  }
   0x5   :  { %s1407_s20 = smov 0   ;;  %s1409_s21 = smov 0  }
   0x6 LB: > { %s1424_s22 = sadd.s32 4294967295, %s1348_s21   ;;  %s976_s23 = sadd.s32 4294967294, %s1348_s21   ;;  %s1348_s21 = sphi %s1409_s21, %s1688_s21   ;;  %s1344_s20 = sphi %s1407_s20, %s1687_s20   ;;  %s1340_s19 = sphi %s1405_s19, %s1686_s19   ;;  %s1336_s18 = sphi %s1403_s18, %s1685_s18  }
   0x7   : > { %p42_p0 = scmp.ne.s32.totalorder %s1340_s19, %s1336_s18  ;;  %p1667_p1 = scmp.eq.s32.totalorder %s1424_s22, 0 }
   0x8   : > { %p156_p3 = scmp.eq.s32.totalorder %s976_s23, 1  ;;  %p977_p5 = scmp.ge.s32.totalorder %s1348_s21, 1 }
   0x9   : > { %p1433_p4 = por %p1667_p1, %p42_p0  ;;  %p163_p7 = scmp.lt.s32.totalorder %s1348_s21, 3 }
   0xa   : > { %p1438_p6 = por %p156_p3, %p42_p0  ;;  %s1350_s27 = smov [#allocation5]  }
   0xb   : > { %s1671_s24 = scalar_select %p1433_p4, 1, 0 }
   0xc   : > { %s1672_s25 = scalar_select %p1438_p6, 1, 0 }
   0xd   : > { %p1443_p8 = pnand %p977_p5, %p163_p7  ;;  %s175_s28 = sshll.u32 %s1350_s27, 4  ;;  %s176_s28 = int_to_ptr.vmem [resolvable:$true] %s175_s28 }
   0xe   : > { %s1351_s30 = smov [#allocation7]   ;;  %s1211_s7 = scalar_lea.vmem %s176_s28, 256 }
   0xf   : > { %s1673_s26 = scalar_select %p1443_p8, 1, 0 }
  0x10   : > { %p1106_p9 = pneg %p1443_p8  ;;  %s191_s6 = sshll.u32 %s1351_s30, 4  ;;  %s192_s6 = int_to_ptr.vmem [resolvable:$true] %s191_s6 }
  0x11   : > { %p1212_p13 = scmp.ne.s32.totalorder %s176_s28, %s1211_s7  ;;  %p1219_p5 = scmp.lt.s32.totalorder %s176_s28, %s176_s28 }
  0x12   : > { %p1452_p11 = pnand %p1106_p9, %p1667_p1  ;;  %p1220_p7 = scmp.lt.s32.totalorder %s1211_s7, %s1211_s7 }
  0x14   : > { %p1202_p12 = pneg %p1452_p11  ;;  %p1221_p10 = por %p1220_p7, %p1219_p5 }
  0x16   : > { %p1214_p0 = pnand %p1212_p13, %p1202_p12 }
  0x18   : > { %p1215_p3 = pneg %p1214_p0 }
  0x1a   : > { %p1222_p9 = pnand %p1221_p10, %p1215_p3 }
  0x1c   : > { %1225 = shalt.err (!%p1222_p9)
}
  0x1d   : > { %s1352_s8 = smov 64   ;;  %s1353_s9 = smov 4  }
  0x1e   : > { %1109 = dma.hbm_to_vmem [thread:$0]  (!%p1452_p11), %s1662_s1, 256, %s176_s28, [#allocation6], %s1352_s8, %s1352_s8, %s1353_s9  }
  0x1f   : > { %s1237_s12 = scalar_lea.vmem %s192_s6, 256  ;;  %p1245_p2 = scmp.lt.s32.totalorder %s192_s6, %s192_s6 }
  0x20   : > { %p1238_p1 = scmp.ne.s32.totalorder %s192_s6, %s1237_s12  ;;  %p1246_p6 = scmp.lt.s32.totalorder %s1237_s12, %s1237_s12 }
  0x22   : > { %p1240_p13 = pnand %p1238_p1, %p1202_p12  ;;  %p1247_p5 = por %p1246_p6, %p1245_p2 }
  0x24   : > { %p1241_p0 = pneg %p1240_p13 }
  0x26   : > { %p1248_p10 = pnand %p1247_p5, %p1241_p0 }
  0x28   : > { %1251 = shalt.err (!%p1248_p10)
}
  0x29   : > { %1112 = dma.hbm_to_vmem [thread:$0]  (!%p1452_p11), %s1664_s3, 256, %s192_s6, [#allocation6], %s1352_s8, %s1352_s8, %s1353_s9  }
  0x2a   : > { %s1475_s15 = sadd.s32 1, %s1348_s21   ;;  %s29_s16 = sadd.s32 1, %s1344_s20 }
  0x2b   : > { %s26_s17 = ssub.s32 %s1348_s21, %s1475_s15  ;;  %p36_p1 = scmp.ne.s32.totalorder %s1344_s20, %s1340_s19 }
  0x2c   : > { %p27_p2 = scmp.eq.s32.totalorder %s26_s17, 0  ;;  %p37_p6 = scmp.eq.s32.totalorder %s1348_s21, 0 }
  0x2d   : > { %p1675_p12 = scmp.eq.s32.totalorder %s1424_s22, 1  ;;  %p1123_p7 = scmp.lt.s32.totalorder %s1348_s21, 2 }
  0x2e   : > { %s1491_s27 = scalar_select %p27_p2, %s1344_s20, %s29_s16  }
  0x2f   : > { %p1485_p3 = por %p1675_p12, %p36_p1  ;;  %p38_p9 = por %p37_p6, %p36_p1 }
  0x30   : > { %s208_s28 = sand.u32 1, %s1344_s20   ;;  %s982_s30 = sshll.u32 %s1348_s21, 6 }
  0x31   : > { %s1676_s23 = scalar_select %p1485_p3, 1, 0 }
  0x32   : > { %s981_s29 = sshll.u32 %s208_s28, 2  ;;  %s1498_s8 = scalar_lea.hbm %s1661_s0, %s982_s30 }
  0x33   : > { %s212_s9 = scalar_lea.vmem [#allocation2], %s981_s29  ;;  %p1500_p11 = pnand %p1123_p7, %p38_p9 }
  0x34   : > { %s219_s10 = sshll.u32 %s212_s9, 4  ;;  %s209_s12 = scalar_lea.sflag [#allocation3], %s208_s28  ;;  %s220_s10 = int_to_ptr.vmem [resolvable:$true] %s219_s10 }
  0x35   : > { %s1252_s13 = scalar_lea.hbm %s1498_s8, 64  ;;  %p1254_p0 = pneg %p1500_p11 }
  0x36   : > { %p1253_p13 = scmp.ne.s32.totalorder %s1498_s8, %s1252_s13  ;;  %s1257_s17 = scalar_lea.hbm %s1661_s0, 128 }
  0x37   : > { %p1258_p1 = scmp.lt.s32.totalorder %s1498_s8, %s1661_s0  ;;  %p1259_p2 = scmp.lt.s32.totalorder %s1257_s17, %s1252_s13 }
  0x38   : > { %p1255_p5 = pnand %p1254_p0, %p1253_p13 }
  0x39   : > { %p1260_p6 = por %p1259_p2, %p1258_p1 }
  0x3a   : > { %p1256_p10 = pneg %p1255_p5 }
  0x3c   : > { %p1261_p12 = pnand %p1260_p6, %p1256_p10 }
  0x3e   : > { %1264 = shalt.err (!%p1261_p12)
}
  0x3f   : > { %s1265_s6 = scalar_lea.vmem %s220_s10, 64  ;;  %s1354_s28 = smov [#allocation2]  }
  0x40   : > { %p1266_p7 = scmp.ne.s32.totalorder %s220_s10, %s1265_s6  ;;  %s1270_s7 = sshll.u32 %s1354_s28, 4  ;;  %s1271_s7 = int_to_ptr.vmem [resolvable:$false] %s1270_s7 }
  0x41   : > { %s1272_s9 = scalar_lea.vmem %s1271_s7, 128  ;;  %p1273_p13 = scmp.lt.s32.totalorder %s220_s10, %s1271_s7 }
  0x42   : > { %p1268_p9 = pnand %p1266_p7, %p1254_p0  ;;  %p1274_p5 = scmp.lt.s32.totalorder %s1272_s9, %s1265_s6 }
  0x44   : > { %p1269_p3 = pneg %p1268_p9  ;;  %p1275_p4 = por %p1274_p5, %p1273_p13 }
  0x46   : > { %p1276_p8 = pnand %p1275_p4, %p1269_p3 }
  0x48   : > { %1279 = shalt.err (!%p1276_p8)
}
  0x49   : > { %1116 = dma.hbm_to_vmem [thread:$0]  (!%p1500_p11), %s1498_s8, 64, %s220_s10, %s209_s12  }
  0x4a   : > { %p1678_p10 = scmp.ne.s32.totalorder %s1673_s26, 0 }
  0x4b   : > { %s1521_s13 = sand.u32 (!%p1678_p10), 1, %s1340_s19   ;;  %p1679_p0 = scmp.ne.s32.totalorder (!%p1678_p10), %s1671_s24, 0 }
  0x4c   : > { %228 = sbr.rel (%p1678_p10) target bundleno = 1505 (0x5e1), region = 40  ;;  %s984_s14 = sshll.u32 (!%p1678_p10), %s1521_s13, 2 }
  0x4d   : > { %s231_s16 = scalar_lea.sflag (!%p1678_p10), [#allocation3], %s1521_s13  ;;  %s234_s17 = scalar_lea.vmem (!%p1678_p10), [#allocation2], %s984_s14 }
  0x51   : > { %1323 = dma.done.wait (%p1679_p0), %s231_s16, 64  }
  0x52   : > { %1325 = vsyncadd (%p1679_p0), %s231_s16, 4294967232  ;;  %p1680_p4 = scmp.eq.s32.totalorder %s1424_s22, 0 }
  0x54   : > { %1327 = dma.done.wait (%p1680_p4), [#allocation6], 512   ;;  %p1681_p8 = pmov %p1680_p4 }
  0x55   : > { %v1355_v0 = vmov 0.0   ;;  %vm1356_vm0 = vmmov 0   ;;  %v1180_v1 = vld [vmem:[#allocation5 + $0x8] sm:$0xff]   ;;  %v1181_v2 = vld [vmem:[#allocation5] sm:$0xff]   ;;  %v270_v3 = vld [vmem:[%s234_s17] sm:$0xf]  ;;  %v339_v22 = vlaneseq }
  0x56   : > { %1329 = vsyncadd (%p1681_p8), [#allocation6], 4294966784  ;;  %1030 = vmatprep.subr.bf16.mxu0 %v1355_v0  ;;  %1034 = vmatprep.mubr.msk.bf16.mxu0 %vm1356_vm0, %v1355_v0  ;;  %vm294_vm1 = vcmask 261120   ;;  %v988_v4 = vld [vmem:[%s1663_s2] ss:$0 sm:$0xff]  ;;  %s1357_s8 = smov 120  }
  0x57   : > { %1038 = vmatprep.subr.bf16.mxu1 %v1355_v0  ;;  %1040 = vmatprep.mubr.msk.bf16.mxu1 %vm1356_vm0, %v1355_v0  ;;  %s1358_s10 = smov 96   ;;  %s1359_s11 = smov 80   ;;  %vm350_vm2 = vcmask 64512   ;;  %v340_v23 = vshrl.u32 %v339_v22, 7  ;;  %v342_v24 = vand.u32 127, %v339_v22  ;;  %vm414_vm6 = vcmask 1043456  }
  0x58   : > { %1031 = vmatpush3.bf16.msra.mxu0 %v1180_v1  ;;  %s1360_s12 = smov 88   ;;  %s1361_s30 = smov 72   ;;  %v1364_v25 = vmov -1e+30   ;;  %vm801_vm7 = vcmask 130048   ;;  %vm803_vm8 = vcmask 195584  }
  0x59   : > { %1032 = vmatprep.subr.bf16.mxu0 %v1355_v0  ;;  %s1362_s29 = smov 112   ;;  %s1363_s6 = smov 104   ;;  %vm343_vm3 = vcmp.le.s32.totalorder %v342_v24, %v340_v23  ;;  %vm344_vm4 = vcmp.lt.s32.totalorder %v342_v24, 5 }
  0x5a   : > { %vm345_vm5 = vmor %vm343_vm3, %vm344_vm4  ;;  %s1365_s28 = smov 56   ;;  %s1366_s7 = smov 64  }
  0x5b   : > { %v346_v26 = vsel %vm345_vm5, 0.0, %v1364_v25  ;;  %s1367_s9 = smov 40   ;;  %s1368_s14 = smov 48  }
  0x5c   : > { %1033 = vmatpush3.bf16.msra.mxu0 %v1181_v2  ;;  %s1369_s16 = smov 8   ;;  %s1370_s17 = smov 16  }
  0x5d   : > { %1044 = vmatprep.subr.bf16.mxu0 %v1355_v0  ;;  %s1371_s24 = smov 24   ;;  %s987_s26 = sshll.u32 %s1521_s13, 3 }
  0x5e   : > { %p1682_p11 = scmp.ne.s32.totalorder %s1676_s23, 0 }
  0x5f   : > { %1035 = vmatmul.mubr.msk.bf16.vlgmr.msra.gmra.mxu0 %vm294_vm1, %v270_v3 }
  0x60   : > { %1046 = vmatprep.mubr.msk.bf16.mxu0 %vm1356_vm0, %v1355_v0 }
 0x11f   : > { %v332_v5 = vpop.f32.mrf.mxu0 }
 0x120   : > { %v333_v6 = vadd.f32 %v988_v4, %v332_v5 }
 0x121   : > { %v1036_v7 = vpop.f32.mrf.mxu0 }
 0x122   : > { %v1547_v8 = vpack.c.bf16 %v333_v6, %v333_v6 }
 0x123   : > { %v335_v9 = vpop.f32.mrf.mxu0 }
 0x124   : > { %458 = vrot.lane.b32.xlu1 %v1547_v8, %s1357_s8  ;;  %348 = vrot.lane.b32.xlu0 %v1547_v8, %s1358_s10 }
 0x125   : > { %v1037_v10 = vpop.f32.mrf.mxu0 }
 0x128   : > { %570 = vrot.lane.b32.xlu1 %v1547_v8, %s1359_s11  ;;  %460 = vrot.lane.b32.xlu0 %v1547_v8, %s1360_s12  ;;  %s1005_s11 = sshll.u32 %s1424_s22, 7  ;;  %s268_s12 = scalar_lea.vmem [#allocation8], %s987_s26 }
 0x12c   : > { %680 = vrot.lane.b32.xlu1 %v1547_v8, %s1361_s30  ;;  %568 = vrot.lane.b32.xlu0 %v1547_v8, %s1362_s29  ;;  %s887_s30 = sshll.u32 %s268_s12, 4  ;;  %s1619_s30 = int_to_ptr.vmem [resolvable:$true] %s887_s30 }
 0x12d   : > { %s1280_s22 = scalar_lea.vmem %s1619_s30, 128 }
 0x12e   : > { %p1281_p3 = scmp.ne.s32.totalorder %s1619_s30, %s1280_s22 }
 0x130   : > { %678 = vrot.lane.b32.xlu0 %v1547_v8, %s1363_s6  ;;  %p1282_p1 = pnand %p1281_p3, %p1682_p11 }
 0x132   : > { %p1283_p2 = pneg %p1282_p1 }
 0x196   : > { %v349_v11 = vpop.permute.xlu0 %348  ;;  %v459_v14 = vpop.permute.xlu1 %458 }
 0x197   : > { %v355_v12 = vsel %vm350_vm2, %v349_v11, 0 }
 0x198   : > { %1039 = vmatpush3.bf16.xpose.msra.mxu1 %v355_v12 }
 0x199   : > { %1050 = vmatprep.subr.bf16.mxu1 %v1355_v0 }
 0x19a   : > { %v461_v13 = vpop.permute.xlu0 %460  ;;  %v571_v16 = vpop.permute.xlu1 %570 }
 0x19b   : > { %v466_v15 = vsel %vm350_vm2, %v461_v13, 0  ;;  %v576_v17 = vsel %vm350_vm2, %v571_v16, 0 }
 0x19e   : > { %v681_v18 = vpop.permute.xlu1 %680  ;;  %v569_v19 = vpop.permute.xlu0 %568 }
 0x19f   : > { %1041 = vmatmul.mubr.msk.bf16.vlgmr.msra.gmra.mxu1 %vm350_vm2, %v1547_v8  ;;  %v686_v20 = vsel %vm350_vm2, %v681_v18, 0 }
 0x1a0   : > { %1051 = vmatpush3.bf16.xpose.msra.mxu1 %v466_v15  ;;  %1052 = vmatprep.mubr.msk.bf16.mxu1 %vm1356_vm0, %v1355_v0 }
 0x1a1   : > { %1062 = vmatprep.subr.bf16.mxu1 %v1355_v0 }
 0x1a2   : > { %v679_v21 = vpop.permute.xlu0 %678 }
 0x1a7   : > { %1053 = vmatmul.mubr.msk.bf16.vlgmr.msra.gmra.mxu1 %vm350_vm2, %v459_v14 }
 0x1a8   : > { %1063 = vmatpush3.bf16.xpose.msra.mxu1 %v576_v17  ;;  %1064 = vmatprep.mubr.msk.bf16.mxu1 %vm1356_vm0, %v1355_v0 }
 0x1a9   : > { %1074 = vmatprep.subr.bf16.mxu1 %v1355_v0 }
 0x1af   : > { %1065 = vmatmul.mubr.msk.bf16.vlgmr.msra.gmra.mxu1 %vm350_vm2, %v569_v19 }
 0x1b0   : > { %1075 = vmatpush3.bf16.xpose.msra.mxu1 %v686_v20  ;;  %1076 = vmatprep.mubr.msk.bf16.mxu1 %vm1356_vm0, %v1355_v0 }
 0x1b1   : > { %1086 = vmatprep.subr.bf16.mxu1 %v1355_v0 }
 0x1b7   : > { %1077 = vmatmul.mubr.msk.bf16.vlgmr.msra.gmra.mxu1 %vm350_vm2, %v679_v21 }
 0x1b8   : > { %1090 = vmatprep.mubr.msk.bf16.mxu1 %vm1356_vm0, %v1355_v0 }
 0x25f   : > { %v391_v27 = vpop.f32.mrf.mxu1 }
 0x260   : > { %v392_v28 = vadd.f32 %v391_v27, %v346_v26 }
 0x261   : > { %v1042_v29 = vpop.f32.mrf.mxu1 }
 0x262   : > { %v397_v30 = vsel %vm350_vm2, %v392_v28, -inf }
 0x263   : > { %398 = vmax.xlane.f32.xlu1 %v397_v30  ;;  %v394_v31 = vpop.f32.mrf.mxu1 }
 0x265   : > { %v1043_v32 = vpop.f32.mrf.mxu1 }
 0x267   : > { %v502_v33 = vpop.f32.mrf.mxu1 }
 0x268   : > { %v503_v34 = vadd.f32 %v502_v33, %v346_v26 }
 0x269   : > { %v1054_v35 = vpop.f32.mrf.mxu1 }
 0x26a   : > { %v508_v36 = vsel %vm350_vm2, %v503_v34, -inf }
 0x26b   : > { %509 = vmax.xlane.f32.xlu0 %v508_v36  ;;  %v505_v37 = vpop.f32.mrf.mxu1 }
 0x26d   : > { %v1055_v38 = vpop.f32.mrf.mxu1 }
 0x26f   : > { %v612_v39 = vpop.f32.mrf.mxu1 }
 0x270   : > { %v613_v40 = vadd.f32 %v612_v39, %v346_v26 }
 0x271   : > { %v1066_v41 = vpop.f32.mrf.mxu1 }
 0x272   : > { %v618_v42 = vsel %vm350_vm2, %v613_v40, -inf  ;;  %v1183_v41 = vld [vmem:[#allocation7] sm:$0xff]  }
 0x273   : > { %619 = vmax.xlane.f32.xlu0 %v618_v42  ;;  %v615_v43 = vpop.f32.mrf.mxu1 }
 0x275   : > { %v1067_v44 = vpop.f32.mrf.mxu1 }
 0x277   : > { %v722_v45 = vpop.f32.mrf.mxu1 }
 0x278   : > { %v723_v46 = vadd.f32 %v722_v45, %v346_v26 }
 0x279   : > { %v1078_v47 = vpop.f32.mrf.mxu1 }
 0x27a   : > { %v728_v48 = vsel %vm350_vm2, %v723_v46, -inf }
 0x27b   : > { %729 = vmax.xlane.f32.xlu1 %v728_v48  ;;  %v725_v49 = vpop.f32.mrf.mxu1 }
 0x27d   : > { %v1079_v50 = vpop.f32.mrf.mxu1 }
 0x2ec   : > { %v399_v51 = vpop.xlane.xlu1 %398 }
 0x2ed   : > { %v400_v52 = vsub.f32 %v392_v28, %v399_v51 }
 0x2ef   : > { %v401_v53 = vmul.f32 1.442695, %v400_v52 }
 0x2f1   : > { %1184 = vpow2.f32 %v401_v53 }
 0x2f4   : > { %v510_v54 = vpop.xlane.xlu0 %509 }
 0x2f5   : > { %v511_v55 = vsub.f32 %v503_v34, %v510_v54 }
 0x2f7   : > { %v512_v56 = vmul.f32 1.442695, %v511_v55 }
 0x2f9   : > { %1186 = vpow2.f32 %v512_v56  ;;  %v1000_v56 = vld [vmem:[%s1665_s4] ss:$0 sm:$0xff] }
 0x2fc   : > { %v620_v57 = vpop.xlane.xlu0 %619 }
 0x2fd   : > { %v621_v58 = vsub.f32 %v613_v40, %v620_v57  ;;  %v1182_v40 = vld [vmem:[#allocation7 + $0x8] sm:$0xff]  }
 0x2fe   : > { %v1185_v59 = vpop.eup %1184  ;;  %1087 = vmatpush3.bf16.msra.mxu1 %v1182_v40 }
 0x2ff   : > { %v622_v60 = vmul.f32 1.442695, %v621_v58  ;;  %v403_v61 = vsel %vm350_vm2, %v1185_v59, 0.0  ;;  %1088 = vmatprep.subr.bf16.mxu1 %v1355_v0 }
 0x300   : > { %404 = vadd.xlane.f32.xlu0 %v403_v61 }
 0x301   : > { %1188 = vpow2.f32 %v622_v60 }
 0x302   : > { %1089 = vmatpush3.bf16.msra.mxu1 %v1183_v41 }
 0x304   : > { %v730_v3 = vpop.xlane.xlu1 %729 }
 0x305   : > { %v731_v4 = vsub.f32 %v723_v46, %v730_v3 }
 0x306   : > { %v1187_v62 = vpop.eup %1186 }
 0x307   : > { %v514_v63 = vsel %vm350_vm2, %v1187_v62, 0.0  ;;  %v732_v5 = vmul.f32 1.442695, %v731_v4 }
 0x308   : > { %515 = vadd.xlane.f32.xlu1 %v514_v63 }
 0x309   : > { %1190 = vpow2.f32 %v732_v5 }
 0x30e   : > { %v1189_v1 = vpop.eup %1188 }
 0x30f   : > { %v624_v2 = vsel %vm350_vm2, %v1189_v1, 0.0 }
 0x310   : > { %625 = vadd.xlane.f32.xlu0 %v624_v2 }
 0x316   : > { %v1191_v6 = vpop.eup %1190 }
 0x317   : > { %v734_v7 = vsel %vm350_vm2, %v1191_v6, 0.0 }
 0x319   : > { %520 = vrot.lane.b32.xlu1 %v1547_v8, %s1365_s28  ;;  %s1617_s28 = scalar_lea.hbm %s1666_s5, %s1005_s11 }
 0x326   : > { %409 = vrot.lane.b32.xlu0 %v1547_v8, %s1366_s7  ;;  %s874_s7 = scalar_lea.sflag [#allocation4], %s1521_s13 }
 0x32a   : > { %740 = vrot.lane.b32.xlu0 %v1547_v8, %s1367_s9  ;;  %s1372_s9 = smov [#allocation8]  }
 0x33d   : > { %735 = vadd.xlane.f32.xlu1 %v734_v7 }
 0x34e   : > { %630 = vrot.lane.b32.xlu1 %v1547_v8, %s1368_s14  ;;  %s1284_s14 = sshll.u32 %s1372_s9, 4  ;;  %s1285_s14 = int_to_ptr.vmem [resolvable:$false] %s1284_s14 }
 0x34f   : > { %p1287_p6 = scmp.lt.s32.totalorder %s1619_s30, %s1285_s14 }
 0x389   : > { %v405_v9 = vpop.xlane.xlu0 %404 }
 0x38a   : > { %1192 = vrcp.f32 %v405_v9 }
 0x391   : > { %v516_v10 = vpop.xlane.xlu1 %515 }
 0x392   : > { %1194 = vrcp.f32 %v516_v10 }
 0x395   : > { %v521_v16 = vpop.permute.xlu1 %520 }
 0x396   : > { %v526_v19 = vsel %vm414_vm6, %v521_v16, 0 }
 0x397   : > { %v1193_v11 = vpop.eup %1192 }
 0x398   : > { %v407_v13 = vmul.f32 %v1193_v11, %v1185_v59 }
 0x399   : > { %v626_v12 = vpop.xlane.xlu0 %625 }
 0x39a   : > { %v408_v17 = vpack.c.bf16 %v407_v13, %v407_v13  ;;  %1196 = vrcp.f32 %v626_v12 }
 0x39d   : > { %v410_v14 = vpop.permute.xlu0 %409 }
 0x39e   : > { %v416_v15 = vsel %vm414_vm6, %v410_v14, 0 }
 0x39f   : > { %1045 = vmatpush3.bf16.msra.mxu0 %v416_v15  ;;  %v1195_v18 = vpop.eup %1194 }
 0x3a0   : > { %1056 = vmatprep.subr.bf16.mxu0 %v1355_v0  ;;  %v518_v8 = vmul.f32 %v1195_v18, %v1187_v62 }
 0x3a1   : > { %v741_v26 = vpop.permute.xlu0 %740 }
 0x3a2   : > { %1047 = vmatmul.mubr.msk.bf16.vlgmr.msra.gmra.mxu0 %vm350_vm2, %v408_v17  ;;  %v519_v20 = vpack.c.bf16 %v518_v8, %v518_v8  ;;  %v746_v28 = vsel %vm414_vm6, %v741_v26, 0 }
 0x3a3   : > { %1057 = vmatpush3.bf16.msra.mxu0 %v526_v19  ;;  %1058 = vmatprep.mubr.msk.bf16.mxu0 %vm1356_vm0, %v1355_v0 }
 0x3a4   : > { %1068 = vmatprep.subr.bf16.mxu0 %v1355_v0 }
 0x3a7   : > { %v1197_v21 = vpop.eup %1196 }
 0x3a8   : > { %v628_v23 = vmul.f32 %v1197_v21, %v1189_v1 }
 0x3aa   : > { %1059 = vmatmul.mubr.msk.bf16.vlgmr.msra.gmra.mxu0 %vm350_vm2, %v519_v20  ;;  %v629_v27 = vpack.c.bf16 %v628_v23, %v628_v23 }
 0x3ab   : > { %1070 = vmatprep.mubr.msk.bf16.mxu0 %vm1356_vm0, %v1355_v0 }
 0x3c6   : > { %v736_v22 = vpop.xlane.xlu1 %735 }
 0x3c7   : > { %1198 = vrcp.f32 %v736_v22 }
 0x3ca   : > { %v631_v24 = vpop.permute.xlu1 %630 }
 0x3cb   : > { %v636_v25 = vsel %vm414_vm6, %v631_v24, 0 }
 0x3cc   : > { %1069 = vmatpush3.bf16.msra.mxu0 %v636_v25 }
 0x3cd   : > { %1080 = vmatprep.subr.bf16.mxu0 %v1355_v0 }
 0x3cf   : > { %1071 = vmatmul.mubr.msk.bf16.vlgmr.msra.gmra.mxu0 %vm350_vm2, %v629_v27 }
 0x3d0   : > { %1081 = vmatpush3.bf16.msra.mxu0 %v746_v28  ;;  %1082 = vmatprep.mubr.msk.bf16.mxu0 %vm1356_vm0, %v1355_v0 }
 0x3d4   : > { %v1199_v29 = vpop.eup %1198 }
 0x3d5   : > { %v738_v30 = vmul.f32 %v1199_v29, %v1191_v6 }
 0x3d7   : > { %v739_v31 = vpack.c.bf16 %v738_v30, %v738_v30 }
 0x3d9   : > { %1083 = vmatmul.mubr.msk.bf16.vlgmr.msra.gmra.mxu0 %vm350_vm2, %v739_v31 }
 0x462   : > { %v452_v32 = vpop.f32.mrf.mxu0 }
 0x464   : > { %v1048_v33 = vpop.f32.mrf.mxu0 }
 0x466   : > { %v455_v34 = vpop.f32.mrf.mxu0 }
 0x468   : > { %v1049_v35 = vpop.f32.mrf.mxu0 }
 0x46a   : > { %v562_v36 = vpop.f32.mrf.mxu0 }
 0x46b   : > { %789 = vrot.lane.b32.xlu1 %v562_v36, %s1369_s16  ;;  %s1286_s16 = scalar_lea.vmem %s1285_s14, 256 }
 0x46c   : > { %v1060_v37 = vpop.f32.mrf.mxu0  ;;  %p1288_p12 = scmp.lt.s32.totalorder %s1286_s16, %s1280_s22 }
 0x46e   : > { %v565_v38 = vpop.f32.mrf.mxu0  ;;  %p1289_p7 = por %p1288_p12, %p1287_p6 }
 0x470   : > { %v1061_v39 = vpop.f32.mrf.mxu0  ;;  %p1290_p9 = pnand %p1289_p7, %p1283_p2 }
 0x48f   : > { %v672_v42 = vpop.f32.mrf.mxu0 }
 0x490   : > { %793 = vrot.lane.b32.xlu0 %v672_v42, %s1370_s17 }
 0x491   : > { %v1072_v43 = vpop.f32.mrf.mxu0 }
 0x493   : > { %v675_v44 = vpop.f32.mrf.mxu0 }
 0x495   : > { %v1073_v45 = vpop.f32.mrf.mxu0 }
 0x499   : > { %v782_v46 = vpop.f32.mrf.mxu0 }
 0x49a   : > { %797 = vrot.lane.b32.xlu1 %v782_v46, %s1371_s24 }
 0x49b   : > { %v1084_v47 = vpop.f32.mrf.mxu0 }
 0x49d   : > { %v785_v48 = vpop.f32.mrf.mxu0 }
 0x49f   : > { %v1085_v49 = vpop.f32.mrf.mxu0 }
 0x4dd   : > { %v790_v50 = vpop.permute.xlu1 %789 }
 0x4de   : > { %v800_v0 = vsel %vm350_vm2, %v452_v32, %v790_v50 }
 0x502   : > { %v794_v51 = vpop.permute.xlu0 %793 }
 0x503   : > { %v802_v52 = vsel %vm801_vm7, %v800_v0, %v794_v51 }
 0x50c   : > { %v798_v53 = vpop.permute.xlu1 %797 }
 0x50d   : > { %v804_v54 = vsel %vm803_vm8, %v802_v52, %v798_v53 }
 0x50e   : > { %v805_v55 = vpack.c.bf16 %v804_v54, %v804_v54 }
 0x510   : > { %1091 = vmatmul.mubr.msk.bf16.vlgmr.msra.gmra.mxu1 %vm294_vm1, %v805_v55 }
 0x5d0   : > { %v866_v57 = vpop.f32.mrf.mxu1 }
 0x5d1   : > { %v867_v58 = vadd.f32 %v1000_v56, %v866_v57 }
 0x5d2   : > { %v1092_v59 = vpop.f32.mrf.mxu1 }
 0x5d3   : > { %872 = vst.msk [vmem:[%s268_s12] sm:$0xff] %vm294_vm1, %v867_v58 }
 0x5d4   : > { %v869_v60 = vpop.f32.mrf.mxu1 }
 0x5d5   : > { %1293 = shalt.err (!%p1290_p9)
}
 0x5d6   : > { %s1294_s17 = scalar_lea.hbm %s1617_s28, 128  ;;  %s1298_s26 = scalar_lea.hbm %s1666_s5, 256 }
 0x5d7   : > { %p1295_p13 = scmp.ne.s32.totalorder %s1617_s28, %s1294_s17  ;;  %p1299_p0 = scmp.lt.s32.totalorder %s1617_s28, %s1666_s5 }
 0x5d8   : > { %p1300_p4 = scmp.lt.s32.totalorder %s1298_s26, %s1294_s17 }
 0x5d9   : > { %p1296_p5 = pnand %p1295_p13, %p1682_p11 }
 0x5da   : > { %p1301_p8 = por %p1300_p4, %p1299_p0 }
 0x5db   : > { %p1297_p10 = pneg %p1296_p5 }
 0x5dd   : > { %p1302_p3 = pnand %p1301_p8, %p1297_p10 }
 0x5df   : > { %1305 = shalt.err (!%p1302_p3)
}
 0x5e0   : > { %1104 = dma.vmem_to_hbm [thread:$0]  (%p1682_p11), %s1619_s30, 128, %s1617_s28, %s874_s7   ;;  %v1093_v61 = vpop.f32.mrf.mxu1 }
 0x5e1 PF: > { %s899_s11 = sand.u32 1, %s1336_s18   ;;  %p1683_p1 = scmp.ne.s32.totalorder %s1672_s25, 0 }
 0x5e2   : > { %p1684_p2 = scmp.ge.s32.totalorder %s1348_s21, 2  ;;  %s900_s12 = scalar_lea.sflag [#allocation4], %s899_s11 }
 0x5e4   : > { %p1118_p6 = pnand %p1684_p2, %p1683_p1 }
 0x5e6   : > { %p1119_p12 = pneg %p1118_p6 }
 0x5e8   : > { %1331 = dma.done.wait (%p1119_p12), %s900_s12, 128  }
 0x5e9   : > { %1333 = vsyncadd (%p1119_p12), %s900_s12, 4294967168  ;;  %p19_p7 = scmp.ge.s32.totalorder %s1475_s15, 4   ;;  %s1685_s18 = smov %s1340_s19 }
 0x5ea   : > { %s1686_s19 = smov %s1344_s20  ;;  %s1687_s20 = smov %s1491_s27 }
 0x5eb   : > { %s1688_s21 = smov %s1475_s15  ;;  %21 = sbr.rel (!%p19_p7) target bundleno = 6 (0x6), region = 93 }
 0x5f0   :  { %905 = vsyncpa [#allocation3], 1 }
 0x5f1   :  { %907 = vsyncpa [#allocation3 + $0x1], 1 }
 0x5f2   :  { %908 = vsyncpa [#allocation6], 1 }
 0x5f3   :  { %909 = vsyncpa [#allocation4], 1 }
 0x5f4   :  { %911 = vsyncpa [#allocation4 + $0x1], 1 }

// kernel: tpu_custom_call.1
= control target key start
LH: loop header
LB: loop body
LE: loop exit
PB: predicated region body
PF: predicated region fallthrough
CT: control target
= control target key end

     0   :  { %10 = vsyncpa [#allocation3], 0  ;;  %s1661_s0 = inlined_call_operand.hbm [shape: bf16[2,8,32], index: 0, kind: input, shape index: {}]   ;;  %s1662_s1 = inlined_call_operand.hbm [shape: bf16[32,96], index: 1, kind: input, shape index: {}]   ;;  %s1663_s2 = inlined_call_operand.vmem [shape: f32[1,96], index: 2, kind: input, shape index: {}]   ;;  %s1664_s3 = inlined_call_operand.hbm [shape: bf16[32,32], index: 3, kind: input, shape index: {}]   ;;  %s1665_s4 = inlined_call_operand.vmem [shape: f32[1,32], index: 4, kind: input, shape index: {}]   ;;  %s1666_s5 = inlined_call_operand.hbm [shape: f32[2,8,32], index: 5, kind: output, shape index: {}]  }
   0x1   :  { %12 = vsyncpa [#allocation3 + $0x1], 0 }
   0x2   :  { %13 = vsyncpa [#allocation6], 0 }
   0x3   :  { %14 = vsyncpa [#allocation4], 0 }
   0x4   :  { %16 = vsyncpa [#allocation4 + $0x1], 0  ;;  %s1403_s18 = smov 0   ;;  %s1405_s19 = smov 0  }
   0x5   :  { %s1407_s20 = smov 0   ;;  %s1409_s21 = smov 0  }
   0x6 LB: > { %s1424_s22 = sadd.s32 4294967295, %s1348_s21   ;;  %s976_s23 = sadd.s32 4294967294, %s1348_s21   ;;  %s1348_s21 = sphi %s1409_s21, %s1688_s21   ;;  %s1344_s20 = sphi %s1407_s20, %s1687_s20   ;;  %s1340_s19 = sphi %s1405_s19, %s1686_s19   ;;  %s1336_s18 = sphi %s1403_s18, %s1685_s18  }
   0x7   : > { %p42_p0 = scmp.ne.s32.totalorder %s1340_s19, %s1336_s18  ;;  %p1667_p1 = scmp.eq.s32.totalorder %s1424_s22, 0 }
   0x8   : > { %p156_p3 = scmp.eq.s32.totalorder %s976_s23, 1  ;;  %p977_p5 = scmp.ge.s32.totalorder %s1348_s21, 1 }
   0x9   : > { %p1433_p4 = por %p1667_p1, %p42_p0  ;;  %p163_p7 = scmp.lt.s32.totalorder %s1348_s21, 3 }
   0xa   : > { %p1438_p6 = por %p156_p3, %p42_p0  ;;  %s1350_s27 = smov [#allocation5]  }
   0xb   : > { %s1671_s24 = scalar_select %p1433_p4, 1, 0 }
   0xc   : > { %s1672_s25 = scalar_select %p1438_p6, 1, 0 }
   0xd   : > { %p1443_p8 = pnand %p977_p5, %p163_p7  ;;  %s175_s28 = sshll.u32 %s1350_s27, 4  ;;  %s176_s28 = int_to_ptr.vmem [resolvable:$true] %s175_s28 }
   0xe   : > { %s1351_s30 = smov [#allocation7]   ;;  %s1211_s7 = scalar_lea.vmem %s176_s28, 256 }
   0xf   : > { %s1673_s26 = scalar_select %p1443_p8, 1, 0 }
  0x10   : > { %p1106_p9 = pneg %p1443_p8  ;;  %s191_s6 = sshll.u32 %s1351_s30, 4  ;;  %s192_s6 = int_to_ptr.vmem [resolvable:$true] %s191_s6 }
  0x11   : > { %p1212_p13 = scmp.ne.s32.totalorder %s176_s28, %s1211_s7  ;;  %p1219_p5 = scmp.lt.s32.totalorder %s176_s28, %s176_s28 }
  0x12   : > { %p1452_p11 = pnand %p1106_p9, %p1667_p1  ;;  %p1220_p7 = scmp.lt.s32.totalorder %s1211_s7, %s1211_s7 }
  0x14   : > { %p1202_p12 = pneg %p1452_p11  ;;  %p1221_p10 = por %p1220_p7, %p1219_p5 }
  0x16   : > { %p1214_p0 = pnand %p1212_p13, %p1202_p12 }
  0x18   : > { %p1215_p3 = pneg %p1214_p0 }
  0x1a   : > { %p1222_p9 = pnand %p1221_p10, %p1215_p3 }
  0x1c   : > { %1225 = shalt.err (!%p1222_p9)
}
  0x1d   : > { %s1352_s8 = smov 64   ;;  %s1353_s9 = smov 4  }
  0x1e   : > { %1109 = dma.hbm_to_vmem [thread:$0]  (!%p1452_p11), %s1662_s1, 256, %s176_s28, [#allocation6], %s1352_s8, %s1352_s8, %s1353_s9  }
  0x1f   : > { %s1237_s12 = scalar_lea.vmem %s192_s6, 256  ;;  %p1245_p2 = scmp.lt.s32.totalorder %s192_s6, %s192_s6 }
  0x20   : > { %p1238_p1 = scmp.ne.s32.totalorder %s192_s6, %s1237_s12  ;;  %p1246_p6 = scmp.lt.s32.totalorder %s1237_s12, %s1237_s12 }
  0x22   : > { %p1240_p13 = pnand %p1238_p1, %p1202_p12  ;;  %p1247_p5 = por %p1246_p6, %p1245_p2 }
  0x24   : > { %p1241_p0 = pneg %p1240_p13 }
  0x26   : > { %p1248_p10 = pnand %p1247_p5, %p1241_p0 }
  0x28   : > { %1251 = shalt.err (!%p1248_p10)
}
  0x29   : > { %1112 = dma.hbm_to_vmem [thread:$0]  (!%p1452_p11), %s1664_s3, 256, %s192_s6, [#allocation6], %s1352_s8, %s1352_s8, %s1353_s9  }
  0x2a   : > { %s1475_s15 = sadd.s32 1, %s1348_s21   ;;  %s29_s16 = sadd.s32 1, %s1344_s20 }
  0x2b   : > { %s26_s17 = ssub.s32 %s1348_s21, %s1475_s15  ;;  %p36_p1 = scmp.ne.s32.totalorder %s1344_s20, %s1340_s19 }
  0x2c   : > { %p27_p2 = scmp.eq.s32.totalorder %s26_s17, 0  ;;  %p37_p6 = scmp.eq.s32.totalorder %s1348_s21, 0 }
  0x2d   : > { %p1675_p12 = scmp.eq.s32.totalorder %s1424_s22, 1  ;;  %p1123_p7 = scmp.lt.s32.totalorder %s1348_s21, 2 }
  0x2e   : > { %s1491_s27 = scalar_select %p27_p2, %s1344_s20, %s29_s16  }
  0x2f   : > { %p1485_p3 = por %p1675_p12, %p36_p1  ;;  %p38_p9 = por %p37_p6, %p36_p1 }
  0x30   : > { %s208_s28 = sand.u32 1, %s1344_s20   ;;  %s982_s30 = sshll.u32 %s1348_s21, 6 }
  0x31   : > { %s1676_s23 = scalar_select %p1485_p3, 1, 0 }
  0x32   : > { %s981_s29 = sshll.u32 %s208_s28, 2  ;;  %s1498_s8 = scalar_lea.hbm %s1661_s0, %s982_s30 }
  0x33   : > { %s212_s9 = scalar_lea.vmem [#allocation2], %s981_s29  ;;  %p1500_p11 = pnand %p1123_p7, %p38_p9 }
  0x34   : > { %s219_s10 = sshll.u32 %s212_s9, 4  ;;  %s209_s12 = scalar_lea.sflag [#allocation3], %s208_s28  ;;  %s220_s10 = int_to_ptr.vmem [resolvable:$true] %s219_s10 }
  0x35   : > { %s1252_s13 = scalar_lea.hbm %s1498_s8, 64  ;;  %p1254_p0 = pneg %p1500_p11 }
  0x36   : > { %p1253_p13 = scmp.ne.s32.totalorder %s1498_s8, %s1252_s13  ;;  %s1257_s17 = scalar_lea.hbm %s1661_s0, 128 }
  0x37   : > { %p1258_p1 = scmp.lt.s32.totalorder %s1498_s8, %s1661_s0  ;;  %p1259_p2 = scmp.lt.s32.totalorder %s1257_s17, %s1252_s13 }
  0x38   : > { %p1255_p5 = pnand %p1254_p0, %p1253_p13 }
  0x39   : > { %p1260_p6 = por %p1259_p2, %p1258_p1 }
  0x3a   : > { %p1256_p10 = pneg %p1255_p5 }
  0x3c   : > { %p1261_p12 = pnand %p1260_p6, %p1256_p10 }
  0x3e   : > { %1264 = shalt.err (!%p1261_p12)
}
  0x3f   : > { %s1265_s6 = scalar_lea.vmem %s220_s10, 64  ;;  %s1354_s28 = smov [#allocation2]  }
  0x40   : > { %p1266_p7 = scmp.ne.s32.totalorder %s220_s10, %s1265_s6  ;;  %s1270_s7 = sshll.u32 %s1354_s28, 4  ;;  %s1271_s7 = int_to_ptr.vmem [resolvable:$false] %s1270_s7 }
  0x41   : > { %s1272_s9 = scalar_lea.vmem %s1271_s7, 128  ;;  %p1273_p13 = scmp.lt.s32.totalorder %s220_s10, %s1271_s7 }
  0x42   : > { %p1268_p9 = pnand %p1266_p7, %p1254_p0  ;;  %p1274_p5 = scmp.lt.s32.totalorder %s1272_s9, %s1265_s6 }
  0x44   : > { %p1269_p3 = pneg %p1268_p9  ;;  %p1275_p4 = por %p1274_p5, %p1273_p13 }
  0x46   : > { %p1276_p8 = pnand %p1275_p4, %p1269_p3 }
  0x48   : > { %1279 = shalt.err (!%p1276_p8)
}
  0x49   : > { %1116 = dma.hbm_to_vmem [thread:$0]  (!%p1500_p11), %s1498_s8, 64, %s220_s10, %s209_s12  }
  0x4a   : > { %p1678_p10 = scmp.ne.s32.totalorder %s1673_s26, 0 }
  0x4b   : > { %s1521_s13 = sand.u32 (!%p1678_p10), 1, %s1340_s19   ;;  %p1679_p0 = scmp.ne.s32.totalorder (!%p1678_p10), %s1671_s24, 0 }
  0x4c   : > { %228 = sbr.rel (%p1678_p10) target bundleno = 1505 (0x5e1), region = 40  ;;  %s984_s14 = sshll.u32 (!%p1678_p10), %s1521_s13, 2 }
  0x4d   : > { %s231_s16 = scalar_lea.sflag (!%p1678_p10), [#allocation3], %s1521_s13  ;;  %s234_s17 = scalar_lea.vmem (!%p1678_p10), [#allocation2], %s984_s14 }
  0x51   : > { %1323 = dma.done.wait (%p1679_p0), %s231_s16, 64  }
  0x52   : > { %1325 = vsyncadd (%p1679_p0), %s231_s16, 4294967232  ;;  %p1680_p4 = scmp.eq.s32.totalorder %s1424_s22, 0 }
  0x54   : > { %1327 = dma.done.wait (%p1680_p4), [#allocation6], 512   ;;  %p1681_p8 = pmov %p1680_p4 }
  0x55   : > { %v1355_v0 = vmov 0.0   ;;  %vm1356_vm0 = vmmov 0   ;;  %v1180_v1 = vld [vmem:[#allocation5 + $0x8] sm:$0xff]   ;;  %v1181_v2 = vld [vmem:[#allocation5] sm:$0xff]   ;;  %v270_v3 = vld [vmem:[%s234_s17] sm:$0xf]  ;;  %v339_v22 = vlaneseq }
  0x56   : > { %1329 = vsyncadd (%p1681_p8), [#allocation6], 4294966784  ;;  %1030 = vmatprep.subr.bf16.mxu0 %v1355_v0  ;;  %1034 = vmatprep.mubr.msk.bf16.mxu0 %vm1356_vm0, %v1355_v0  ;;  %vm294_vm1 = vcmask 261120   ;;  %v988_v4 = vld [vmem:[%s1663_s2] ss:$0 sm:$0xff]  ;;  %s1357_s8 = smov 120  }
  0x57   : > { %1038 = vmatprep.subr.bf16.mxu1 %v1355_v0  ;;  %1040 = vmatprep.mubr.msk.bf16.mxu1 %vm1356_vm0, %v1355_v0  ;;  %s1358_s10 = smov 96   ;;  %s1359_s11 = smov 80   ;;  %vm350_vm2 = vcmask 64512   ;;  %v340_v23 = vshrl.u32 %v339_v22, 7  ;;  %v342_v24 = vand.u32 127, %v339_v22  ;;  %vm414_vm6 = vcmask 1043456  }
  0x58   : > { %1031 = vmatpush3.bf16.msra.mxu0 %v1180_v1  ;;  %s1360_s12 = smov 88   ;;  %s1361_s30 = smov 72   ;;  %v1364_v25 = vmov -1e+30   ;;  %vm801_vm7 = vcmask 130048   ;;  %vm803_vm8 = vcmask 195584  }
  0x59   : > { %1032 = vmatprep.subr.bf16.mxu0 %v1355_v0  ;;  %s1362_s29 = smov 112   ;;  %s1363_s6 = smov 104   ;;  %vm343_vm3 = vcmp.le.s32.totalorder %v342_v24, %v340_v23  ;;  %vm344_vm4 = vcmp.lt.s32.totalorder %v342_v24, 5 }
  0x5a   : > { %vm345_vm5 = vmor %vm343_vm3, %vm344_vm4  ;;  %s1365_s28 = smov 56   ;;  %s1366_s7 = smov 64  }
  0x5b   : > { %v346_v26 = vsel %vm345_vm5, 0.0, %v1364_v25  ;;  %s1367_s9 = smov 40   ;;  %s1368_s14 = smov 48  }
  0x5c   : > { %1033 = vmatpush3.bf16.msra.mxu0 %v1181_v2  ;;  %s1369_s16 = smov 8   ;;  %s1370_s17 = smov 16  }
  0x5d   : > { %1044 = vmatprep.subr.bf16.mxu0 %v1355_v0  ;;  %s1371_s24 = smov 24   ;;  %s987_s26 = sshll.u32 %s1521_s13, 3 }
  0x5e   : > { %p1682_p11 = scmp.ne.s32.totalorder %s1676_s23, 0 }
  0x5f   : > { %1035 = vmatmul.mubr.msk.bf16.vlgmr.msra.gmra.mxu0 %vm294_vm1, %v270_v3 }
  0x60   : > { %1046 = vmatprep.mubr.msk.bf16.mxu0 %vm1356_vm0, %v1355_v0 }
 0x11f   : > { %v332_v5 = vpop.f32.mrf.mxu0 }
 0x120   : > { %v333_v6 = vadd.f32 %v988_v4, %v332_v5 }
 0x121   : > { %v1036_v7 = vpop.f32.mrf.mxu0 }
 0x122   : > { %v1547_v8 = vpack.c.bf16 %v333_v6, %v333_v6 }
 0x123   : > { %v335_v9 = vpop.f32.mrf.mxu0 }
 0x124   : > { %458 = vrot.lane.b32.xlu1 %v1547_v8, %s1357_s8  ;;  %348 = vrot.lane.b32.xlu0 %v1547_v8, %s1358_s10 }
 0x125   : > { %v1037_v10 = vpop.f32.mrf.mxu0 }
 0x128   : > { %570 = vrot.lane.b32.xlu1 %v1547_v8, %s1359_s11  ;;  %460 = vrot.lane.b32.xlu0 %v1547_v8, %s1360_s12  ;;  %s1005_s11 = sshll.u32 %s1424_s22, 7  ;;  %s268_s12 = scalar_lea.vmem [#allocation8], %s987_s26 }
 0x12c   : > { %680 = vrot.lane.b32.xlu1 %v1547_v8, %s1361_s30  ;;  %568 = vrot.lane.b32.xlu0 %v1547_v8, %s1362_s29  ;;  %s887_s30 = sshll.u32 %s268_s12, 4  ;;  %s1619_s30 = int_to_ptr.vmem [resolvable:$true] %s887_s30 }
 0x12d   : > { %s1280_s22 = scalar_lea.vmem %s1619_s30, 128 }
 0x12e   : > { %p1281_p3 = scmp.ne.s32.totalorder %s1619_s30, %s1280_s22 }
 0x130   : > { %678 = vrot.lane.b32.xlu0 %v1547_v8, %s1363_s6  ;;  %p1282_p1 = pnand %p1281_p3, %p1682_p11 }
 0x132   : > { %p1283_p2 = pneg %p1282_p1 }
 0x196   : > { %v349_v11 = vpop.permute.xlu0 %348  ;;  %v459_v14 = vpop.permute.xlu1 %458 }
 0x197   : > { %v355_v12 = vsel %vm350_vm2, %v349_v11, 0 }
 0x198   : > { %1039 = vmatpush3.bf16.xpose.msra.mxu1 %v355_v12 }
 0x199   : > { %1050 = vmatprep.subr.bf16.mxu1 %v1355_v0 }
 0x19a   : > { %v461_v13 = vpop.permute.xlu0 %460  ;;  %v571_v16 = vpop.permute.xlu1 %570 }
 0x19b   : > { %v466_v15 = vsel %vm350_vm2, %v461_v13, 0  ;;  %v576_v17 = vsel %vm350_vm2, %v571_v16, 0 }
 0x19e   : > { %v681_v18 = vpop.permute.xlu1 %680  ;;  %v569_v19 = vpop.permute.xlu0 %568 }
 0x19f   : > { %1041 = vmatmul.mubr.msk.bf16.vlgmr.msra.gmra.mxu1 %vm350_vm2, %v1547_v8  ;;  %v686_v20 = vsel %vm350_vm2, %v681_v18, 0 }
 0x1a0   : > { %1051 = vmatpush3.bf16.xpose.msra.mxu1 %v466_v15  ;;  %1052 = vmatprep.mubr.msk.bf16.mxu1 %vm1356_vm0, %v1355_v0 }
 0x1a1   : > { %1062 = vmatprep.subr.bf16.mxu1 %v1355_v0 }
 0x1a2   : > { %v679_v21 = vpop.permute.xlu0 %678 }
 0x1a7   : > { %1053 = vmatmul.mubr.msk.bf16.vlgmr.msra.gmra.mxu1 %vm350_vm2, %v459_v14 }
 0x1a8   : > { %1063 = vmatpush3.bf16.xpose.msra.mxu1 %v576_v17  ;;  %1064 = vmatprep.mubr.msk.bf16.mxu1 %vm1356_vm0, %v1355_v0 }
 0x1a9   : > { %1074 = vmatprep.subr.bf16.mxu1 %v1355_v0 }
 0x1af   : > { %1065 = vmatmul.mubr.msk.bf16.vlgmr.msra.gmra.mxu1 %vm350_vm2, %v569_v19 }
 0x1b0   : > { %1075 = vmatpush3.bf16.xpose.msra.mxu1 %v686_v20  ;;  %1076 = vmatprep.mubr.msk.bf16.mxu1 %vm1356_vm0, %v1355_v0 }
 0x1b1   : > { %1086 = vmatprep.subr.bf16.mxu1 %v1355_v0 }
 0x1b7   : > { %1077 = vmatmul.mubr.msk.bf16.vlgmr.msra.gmra.mxu1 %vm350_vm2, %v679_v21 }
 0x1b8   : > { %1090 = vmatprep.mubr.msk.bf16.mxu1 %vm1356_vm0, %v1355_v0 }
 0x25f   : > { %v391_v27 = vpop.f32.mrf.mxu1 }
 0x260   : > { %v392_v28 = vadd.f32 %v391_v27, %v346_v26 }
 0x261   : > { %v1042_v29 = vpop.f32.mrf.mxu1 }
 0x262   : > { %v397_v30 = vsel %vm350_vm2, %v392_v28, -inf }
 0x263   : > { %398 = vmax.xlane.f32.xlu1 %v397_v30  ;;  %v394_v31 = vpop.f32.mrf.mxu1 }
 0x265   : > { %v1043_v32 = vpop.f32.mrf.mxu1 }
 0x267   : > { %v502_v33 = vpop.f32.mrf.mxu1 }
 0x268   : > { %v503_v34 = vadd.f32 %v502_v33, %v346_v26 }
 0x269   : > { %v1054_v35 = vpop.f32.mrf.mxu1 }
 0x26a   : > { %v508_v36 = vsel %vm350_vm2, %v503_v34, -inf }
 0x26b   : > { %509 = vmax.xlane.f32.xlu0 %v508_v36  ;;  %v505_v37 = vpop.f32.mrf.mxu1 }
 0x26d   : > { %v1055_v38 = vpop.f32.mrf.mxu1 }
 0x26f   : > { %v612_v39 = vpop.f32.mrf.mxu1 }
 0x270   : > { %v613_v40 = vadd.f32 %v612_v39, %v346_v26 }
 0x271   : > { %v1066_v41 = vpop.f32.mrf.mxu1 }
 0x272   : > { %v618_v42 = vsel %vm350_vm2, %v613_v40, -inf  ;;  %v1183_v41 = vld [vmem:[#allocation7] sm:$0xff]  }
 0x273   : > { %619 = vmax.xlane.f32.xlu0 %v618_v42  ;;  %v615_v43 = vpop.f32.mrf.mxu1 }
 0x275   : > { %v1067_v44 = vpop.f32.mrf.mxu1 }
 0x277   : > { %v722_v45 = vpop.f32.mrf.mxu1 }
 0x278   : > { %v723_v46 = vadd.f32 %v722_v45, %v346_v26 }
 0x279   : > { %v1078_v47 = vpop.f32.mrf.mxu1 }
 0x27a   : > { %v728_v48 = vsel %vm350_vm2, %v723_v46, -inf }
 0x27b   : > { %729 = vmax.xlane.f32.xlu1 %v728_v48  ;;  %v725_v49 = vpop.f32.mrf.mxu1 }
 0x27d   : > { %v1079_v50 = vpop.f32.mrf.mxu1 }
 0x2ec   : > { %v399_v51 = vpop.xlane.xlu1 %398 }
 0x2ed   : > { %v400_v52 = vsub.f32 %v392_v28, %v399_v51 }
 0x2ef   : > { %v401_v53 = vmul.f32 1.442695, %v400_v52 }
 0x2f1   : > { %1184 = vpow2.f32 %v401_v53 }
 0x2f4   : > { %v510_v54 = vpop.xlane.xlu0 %509 }
 0x2f5   : > { %v511_v55 = vsub.f32 %v503_v34, %v510_v54 }
 0x2f7   : > { %v512_v56 = vmul.f32 1.442695, %v511_v55 }
 0x2f9   : > { %1186 = vpow2.f32 %v512_v56  ;;  %v1000_v56 = vld [vmem:[%s1665_s4] ss:$0 sm:$0xff] }
 0x2fc   : > { %v620_v57 = vpop.xlane.xlu0 %619 }
 0x2fd   : > { %v621_v58 = vsub.f32 %v613_v40, %v620_v57  ;;  %v1182_v40 = vld [vmem:[#allocation7 + $0x8] sm:$0xff]  }
 0x2fe   : > { %v1185_v59 = vpop.eup %1184  ;;  %1087 = vmatpush3.bf16.msra.mxu1 %v1182_v40 }
 0x2ff   : > { %v622_v60 = vmul.f32 1.442695, %v621_v58  ;;  %v403_v61 = vsel %vm350_vm2, %v1185_v59, 0.0  ;;  %1088 = vmatprep.subr.bf16.mxu1 %v1355_v0 }
 0x300   : > { %404 = vadd.xlane.f32.xlu0 %v403_v61 }
 0x301   : > { %1188 = vpow2.f32 %v622_v60 }
 0x302   : > { %1089 = vmatpush3.bf16.msra.mxu1 %v1183_v41 }
 0x304   : > { %v730_v3 = vpop.xlane.xlu1 %729 }
 0x305   : > { %v731_v4 = vsub.f32 %v723_v46, %v730_v3 }
 0x306   : > { %v1187_v62 = vpop.eup %1186 }
 0x307   : > { %v514_v63 = vsel %vm350_vm2, %v1187_v62, 0.0  ;;  %v732_v5 = vmul.f32 1.442695, %v731_v4 }
 0x308   : > { %515 = vadd.xlane.f32.xlu1 %v514_v63 }
 0x309   : > { %1190 = vpow2.f32 %v732_v5 }
 0x30e   : > { %v1189_v1 = vpop.eup %1188 }
 0x30f   : > { %v624_v2 = vsel %vm350_vm2, %v1189_v1, 0.0 }
 0x310   : > { %625 = vadd.xlane.f32.xlu0 %v624_v2 }
 0x316   : > { %v1191_v6 = vpop.eup %1190 }
 0x317   : > { %v734_v7 = vsel %vm350_vm2, %v1191_v6, 0.0 }
 0x319   : > { %520 = vrot.lane.b32.xlu1 %v1547_v8, %s1365_s28  ;;  %s1617_s28 = scalar_lea.hbm %s1666_s5, %s1005_s11 }
 0x326   : > { %409 = vrot.lane.b32.xlu0 %v1547_v8, %s1366_s7  ;;  %s874_s7 = scalar_lea.sflag [#allocation4], %s1521_s13 }
 0x32a   : > { %740 = vrot.lane.b32.xlu0 %v1547_v8, %s1367_s9  ;;  %s1372_s9 = smov [#allocation8]  }
 0x33d   : > { %735 = vadd.xlane.f32.xlu1 %v734_v7 }
 0x34e   : > { %630 = vrot.lane.b32.xlu1 %v1547_v8, %s1368_s14  ;;  %s1284_s14 = sshll.u32 %s1372_s9, 4  ;;  %s1285_s14 = int_to_ptr.vmem [resolvable:$false] %s1284_s14 }
 0x34f   : > { %p1287_p6 = scmp.lt.s32.totalorder %s1619_s30, %s1285_s14 }
 0x389   : > { %v405_v9 = vpop.xlane.xlu0 %404 }
 0x38a   : > { %1192 = vrcp.f32 %v405_v9 }
 0x391   : > { %v516_v10 = vpop.xlane.xlu1 %515 }
 0x392   : > { %1194 = vrcp.f32 %v516_v10 }
 0x395   : > { %v521_v16 = vpop.permute.xlu1 %520 }
 0x396   : > { %v526_v19 = vsel %vm414_vm6, %v521_v16, 0 }
 0x397   : > { %v1193_v11 = vpop.eup %1192 }
 0x398   : > { %v407_v13 = vmul.f32 %v1193_v11, %v1185_v59 }
 0x399   : > { %v626_v12 = vpop.xlane.xlu0 %625 }
 0x39a   : > { %v408_v17 = vpack.c.bf16 %v407_v13, %v407_v13  ;;  %1196 = vrcp.f32 %v626_v12 }
 0x39d   : > { %v410_v14 = vpop.permute.xlu0 %409 }
 0x39e   : > { %v416_v15 = vsel %vm414_vm6, %v410_v14, 0 }
 0x39f   : > { %1045 = vmatpush3.bf16.msra.mxu0 %v416_v15  ;;  %v1195_v18 = vpop.eup %1194 }
 0x3a0   : > { %1056 = vmatprep.subr.bf16.mxu0 %v1355_v0  ;;  %v518_v8 = vmul.f32 %v1195_v18, %v1187_v62 }
 0x3a1   : > { %v741_v26 = vpop.permute.xlu0 %740 }
 0x3a2   : > { %1047 = vmatmul.mubr.msk.bf16.vlgmr.msra.gmra.mxu0 %vm350_vm2, %v408_v17  ;;  %v519_v20 = vpack.c.bf16 %v518_v8, %v518_v8  ;;  %v746_v28 = vsel %vm414_vm6, %v741_v26, 0 }
 0x3a3   : > { %1057 = vmatpush3.bf16.msra.mxu0 %v526_v19  ;;  %1058 = vmatprep.mubr.msk.bf16.mxu0 %vm1356_vm0, %v1355_v0 }
 0x3a4   : > { %1068 = vmatprep.subr.bf16.mxu0 %v1355_v0 }
 0x3a7   : > { %v1197_v21 = vpop.eup %1196 }
 0x3a8   : > { %v628_v23 = vmul.f32 %v1197_v21, %v1189_v1 }
 0x3aa   : > { %1059 = vmatmul.mubr.msk.bf16.vlgmr.msra.gmra.mxu0 %vm350_vm2, %v519_v20  ;;  %v629_v27 = vpack.c.bf16 %v628_v23, %v628_v23 }
 0x3ab   : > { %1070 = vmatprep.mubr.msk.bf16.mxu0 %vm1356_vm0, %v1355_v0 }
 0x3c6   : > { %v736_v22 = vpop.xlane.xlu1 %735 }
 0x3c7   : > { %1198 = vrcp.f32 %v736_v22 }
 0x3ca   : > { %v631_v24 = vpop.permute.xlu1 %630 }
 0x3cb   : > { %v636_v25 = vsel %vm414_vm6, %v631_v24, 0 }
 0x3cc   : > { %1069 = vmatpush3.bf16.msra.mxu0 %v636_v25 }
 0x3cd   : > { %1080 = vmatprep.subr.bf16.mxu0 %v1355_v0 }
 0x3cf   : > { %1071 = vmatmul.mubr.msk.bf16.vlgmr.msra.gmra.mxu0 %vm350_vm2, %v629_v27 }
 0x3d0   : > { %1081 = vmatpush3.bf16.msra.mxu0 %v746_v28  ;;  %1082 = vmatprep.mubr.msk.bf16.mxu0 %vm1356_vm0, %v1355_v0 }
 0x3d4   : > { %v1199_v29 = vpop.eup %1198 }
 0x3d5   : > { %v738_v30 = vmul.f32 %v1199_v29, %v1191_v6 }
 0x3d7   : > { %v739_v31 = vpack.c.bf16 %v738_v30, %v738_v30 }
 0x3d9   : > { %1083 = vmatmul.mubr.msk.bf16.vlgmr.msra.gmra.mxu0 %vm350_vm2, %v739_v31 }
 0x462   : > { %v452_v32 = vpop.f32.mrf.mxu0 }
 0x464   : > { %v1048_v33 = vpop.f32.mrf.mxu0 }
 0x466   : > { %v455_v34 = vpop.f32.mrf.mxu0 }
 0x468   : > { %v1049_v35 = vpop.f32.mrf.mxu0 }
 0x46a   : > { %v562_v36 = vpop.f32.mrf.mxu0 }
 0x46b   : > { %789 = vrot.lane.b32.xlu1 %v562_v36, %s1369_s16  ;;  %s1286_s16 = scalar_lea.vmem %s1285_s14, 256 }
 0x46c   : > { %v1060_v37 = vpop.f32.mrf.mxu0  ;;  %p1288_p12 = scmp.lt.s32.totalorder %s1286_s16, %s1280_s22 }
 0x46e   : > { %v565_v38 = vpop.f32.mrf.mxu0  ;;  %p1289_p7 = por %p1288_p12, %p1287_p6 }
 0x470   : > { %v1061_v39 = vpop.f32.mrf.mxu0  ;;  %p1290_p9 = pnand %p1289_p7, %p1283_p2 }
 0x48f   : > { %v672_v42 = vpop.f32.mrf.mxu0 }
 0x490   : > { %793 = vrot.lane.b32.xlu0 %v672_v42, %s1370_s17 }
 0x491   : > { %v1072_v43 = vpop.f32.mrf.mxu0 }
 0x493   : > { %v675_v44 = vpop.f32.mrf.mxu0 }
 0x495   : > { %v1073_v45 = vpop.f32.mrf.mxu0 }
 0x499   : > { %v782_v46 = vpop.f32.mrf.mxu0 }
 0x49a   : > { %797 = vrot.lane.b32.xlu1 %v782_v46, %s1371_s24 }
 0x49b   : > { %v1084_v47 = vpop.f32.mrf.mxu0 }
 0x49d   : > { %v785_v48 = vpop.f32.mrf.mxu0 }
 0x49f   : > { %v1085_v49 = vpop.f32.mrf.mxu0 }
 0x4dd   : > { %v790_v50 = vpop.permute.xlu1 %789 }
 0x4de   : > { %v800_v0 = vsel %vm350_vm2, %v452_v32, %v790_v50 }
 0x502   : > { %v794_v51 = vpop.permute.xlu0 %793 }
 0x503   : > { %v802_v52 = vsel %vm801_vm7, %v800_v0, %v794_v51 }
 0x50c   : > { %v798_v53 = vpop.permute.xlu1 %797 }
 0x50d   : > { %v804_v54 = vsel %vm803_vm8, %v802_v52, %v798_v53 }
 0x50e   : > { %v805_v55 = vpack.c.bf16 %v804_v54, %v804_v54 }
 0x510   : > { %1091 = vmatmul.mubr.msk.bf16.vlgmr.msra.gmra.mxu1 %vm294_vm1, %v805_v55 }
 0x5d0   : > { %v866_v57 = vpop.f32.mrf.mxu1 }
 0x5d1   : > { %v867_v58 = vadd.f32 %v1000_v56, %v866_v57 }
 0x5d2   : > { %v1092_v59 = vpop.f32.mrf.mxu1 }
 0x5d3   : > { %872 = vst.msk [vmem:[%s268_s12] sm:$0xff] %vm294_vm1, %v867_v58 }
 0x5d4   : > { %v869_v60 = vpop.f32.mrf.mxu1 }
 0x5d5   : > { %1293 = shalt.err (!%p1290_p9)
}
 0x5d6   : > { %s1294_s17 = scalar_lea.hbm %s1617_s28, 128  ;;  %s1298_s26 = scalar_lea.hbm %s1666_s5, 256 }
 0x5d7   : > { %p1295_p13 = scmp.ne.s32.totalorder %s1617_s28, %s1294_s17  ;;  %p1299_p0 = scmp.lt.s32.totalorder %s1617_s28, %s1666_s5 }
 0x5d8   : > { %p1300_p4 = scmp.lt.s32.totalorder %s1298_s26, %s1294_s17 }
 0x5d9   : > { %p1296_p5 = pnand %p1295_p13, %p1682_p11 }
 0x5da   : > { %p1301_p8 = por %p1300_p4, %p1299_p0 }
 0x5db   : > { %p1297_p10 = pneg %p1296_p5 }
 0x5dd   : > { %p1302_p3 = pnand %p1301_p8, %p1297_p10 }
 0x5df   : > { %1305 = shalt.err (!%p1302_p3)
}
 0x5e0   : > { %1104 = dma.vmem_to_hbm [thread:$0]  (%p1682_p11), %s1619_s30, 128, %s1617_s28, %s874_s7   ;;  %v1093_v61 = vpop.f32.mrf.mxu1 }
 0x5e1 PF: > { %s899_s11 = sand.u32 1, %s1336_s18   ;;  %p1683_p1 = scmp.ne.s32.totalorder %s1672_s25, 0 }
 0x5e2   : > { %p1684_p2 = scmp.ge.s32.totalorder %s1348_s21, 2  ;;  %s900_s12 = scalar_lea.sflag [#allocation4], %s899_s11 }
 0x5e4   : > { %p1118_p6 = pnand %p1684_p2, %p1683_p1 }
 0x5e6   : > { %p1119_p12 = pneg %p1118_p6 }
 0x5e8   : > { %1331 = dma.done.wait (%p1119_p12), %s900_s12, 128  }
 0x5e9   : > { %1333 = vsyncadd (%p1119_p12), %s900_s12, 4294967168  ;;  %p19_p7 = scmp.ge.s32.totalorder %s1475_s15, 4   ;;  %s1685_s18 = smov %s1340_s19 }
 0x5ea   : > { %s1686_s19 = smov %s1344_s20  ;;  %s1687_s20 = smov %s1491_s27 }
 0x5eb   : > { %s1688_s21 = smov %s1475_s15  ;;  %21 = sbr.rel (!%p19_p7) target bundleno = 6 (0x6), region = 93 }
 0x5f0   :  { %905 = vsyncpa [#allocation3], 1 }
 0x5f1   :  { %907 = vsyncpa [#allocation3 + $0x1], 1 }
 0x5f2   :  { %908 = vsyncpa [#allocation6], 1 }
 0x5f3   :  { %909 = vsyncpa [#allocation4], 1 }
 0x5f4   :  { %911 = vsyncpa [#allocation4 + $0x1], 1 }

</bundles_post_ra>
